<compile_context>
chip_gen: v5e
topology: v5e:2x2
jax: 0.10.0
libtpu: 0.0.40
codegen_flags: <defaults>
</compile_context>

<pallas_src>
import functools
import math

import jax
import jax.numpy as jnp
from jax.experimental import pallas as pl
from jax.experimental.pallas import tpu as pltpu

# ---- model hyperparameters (small shapes consistent with the module) --------
INPUT_SIZE = 4                       # tokens per timestep (P)
NUM_CLASSES = 8                      # vocabulary size (C)
EMBED_SIZE = 8                       # embedding dim per token
HIDDEN = 32                          # LSTM hidden size (H)
NUM_LAYERS = 2
E_IN = INPUT_SIZE * EMBED_SIZE       # 32  (LSTM input size = embedding_size*input_size)
OUT_DIM = NUM_CLASSES * INPUT_SIZE   # 32  (fc output size)

BATCH = 2
SEQ = 8


def lstm_kernel(onehot_ref,                      # (S*B, P*C)  bf16, time-major rows
                emb_ref,                         # (P*C, P*E)  bf16 block-diag embedding
                w_ih1_ref, w_hh1_ref, b1_ref,    # (E_IN,4H) (H,4H) bf16, (1,4H) f32
                w_ih2_ref, w_hh2_ref, b2_ref,    # (H,4H)   (H,4H) bf16, (1,4H) f32
                fc_w_ref, fc_b_ref,              # (H,OUT)  bf16,  (1,OUT) f32
                o_ref,                           # (B, OUT) f32
                *, batch, seq):
    B, S, H = batch, seq, HIDDEN
    f32 = jnp.float32
    bf16 = jnp.bfloat16

    # ---- embedding: one-hot @ block-diag(table) -> (S*B, P*E) = (S*B, E_IN) --
    x = jnp.dot(onehot_ref[...], emb_ref[...], preferred_element_type=f32)

    def run_layer(x_seq, w_ih_ref, w_hh_ref, b_ref, collect):
        # Batched input->gate projection over all S*B tokens (one MXU pass,
        # lane-dense 4H=128 output) instead of S tiny per-step matmuls.
        gih = jnp.dot(x_seq.astype(bf16), w_ih_ref[...],
                      preferred_element_type=f32) + b_ref[...]        # (S*B, 4H)
        h = jnp.zeros((B, H), f32)
        c = jnp.zeros((B, H), f32)
        hs = []
        for t in range(S):                       # fully unrolled (S=8)
            g = gih[t * B:(t + 1) * B, :] + jnp.dot(
                h.astype(bf16), w_hh_ref[...], preferred_element_type=f32)
            i_g = jax.nn.sigmoid(g[:, 0 * H:1 * H])   # PyTorch gate order i,f,g,o
            f_g = jax.nn.sigmoid(g[:, 1 * H:2 * H])
            g_g = jnp.tanh(g[:, 2 * H:3 * H])
            o_g = jax.nn.sigmoid(g[:, 3 * H:4 * H])
            c = f_g * c + i_g * g_g
            h = o_g * jnp.tanh(c)
            if collect:
                hs.append(h)
        return (jnp.concatenate(hs, axis=0) if collect else None), h

    # ---- LSTM layer 1 (full output sequence feeds layer 2) -------------------
    h1_seq, _ = run_layer(x, w_ih1_ref, w_hh1_ref, b1_ref, collect=True)
    # TODO(synk): nn.LSTM inter-layer dropout (p=0.5) is training-only; this is
    # the eval-mode forward, so it is the identity here.

    # ---- LSTM layer 2 (only the last timestep's hidden state is needed) ------
    _, h_last = run_layer(h1_seq, w_ih2_ref, w_hh2_ref, b2_ref, collect=False)

    # ---- final fc on lstm_out[:, -1, :] --------------------------------------
    o_ref[...] = jnp.dot(h_last.astype(bf16), fc_w_ref[...],
                         preferred_element_type=f32) + fc_b_ref[...]


def init_params(key):
    """Synthetic weights matching the module's _init_weights:
    weight_ih -> xavier_uniform, weight_hh -> orthogonal, biases -> 0,
    embedding -> N(0,1) (nn.Embedding default), fc -> U(-1/sqrt(H), 1/sqrt(H))."""
    P, C, E, H = INPUT_SIZE, NUM_CLASSES, EMBED_SIZE, HIDDEN
    ks = jax.random.split(key, 6)

    def xavier(k, fan_out, fan_in):
        limit = math.sqrt(6.0 / (fan_in + fan_out))
        return jax.random.uniform(k, (fan_out, fan_in), jnp.float32, -limit, limit)

    def orthogonal(k, rows, cols):
        a = jax.random.normal(k, (rows, cols), jnp.float32)
        q, r = jnp.linalg.qr(a)
        return q * jnp.sign(jnp.diagonal(r))[None, :]

    emb_tbl = jax.random.normal(ks[0], (C, E), jnp.float32)
    # Block-diagonal expansion so "lookup + reshape(B,S,-1)" becomes one matmul:
    # onehot(P tokens concatenated on lanes) @ kron(I_P, table) -> (.., P*E).
    emb_bd = jnp.kron(jnp.eye(P, dtype=jnp.float32), emb_tbl)          # (P*C, P*E)

    w_ih1 = xavier(ks[1], 4 * H, P * E)          # (4H, E_IN)  torch layout
    w_hh1 = orthogonal(ks[2], 4 * H, H)          # (4H, H)
    w_ih2 = xavier(ks[3], 4 * H, H)
    w_hh2 = orthogonal(ks[4], 4 * H, H)
    b1 = jnp.zeros((1, 4 * H), jnp.float32)      # b_ih + b_hh (both zero-init)
    b2 = jnp.zeros((1, 4 * H), jnp.float32)

    kfc = 1.0 / math.sqrt(H)
    fc_w = jax.random.uniform(ks[5], (OUT_DIM, H), jnp.float32, -kfc, kfc)
    fc_b = jnp.zeros((1, OUT_DIM), jnp.float32)

    bf16 = jnp.bfloat16
    # Pre-transpose matmul weights, cast MXU operands to bf16 (halves DMA bytes),
    # keep biases f32 (added in f32 after the f32-accumulated dot).
    return (emb_bd.astype(bf16),
            w_ih1.T.astype(bf16), w_hh1.T.astype(bf16), b1,
            w_ih2.T.astype(bf16), w_hh2.T.astype(bf16), b2,
            fc_w.T.astype(bf16), fc_b)


@jax.jit
def lstm_embed_ball_model(x_idx, params):
    """x_idx: int32 (B, S, input_size) token indices (batch_first, like PyTorch)."""
    B, S, P = x_idx.shape
    # One-hot encode and lay the tokens out time-major (S*B, P*C) so each
    # timestep occupies a contiguous sublane slice inside the kernel.
    onehot = jax.nn.one_hot(x_idx, NUM_CLASSES, dtype=jnp.bfloat16)     # (B,S,P,C)
    onehot = jnp.transpose(onehot, (1, 0, 2, 3)).reshape(S * B, P * NUM_CLASSES)

    kernel = functools.partial(lstm_kernel, batch=B, seq=S)
    cost = pl.CostEstimate(flops=600_000, transcendentals=6_000,
                           bytes_accessed=48_000)
    return pl.pallas_call(
        kernel,
        out_shape=jax.ShapeDtypeStruct((B, OUT_DIM), jnp.float32),
        compiler_params=pltpu.CompilerParams(vmem_limit_bytes=32 * 1024 * 1024),
        cost_estimate=cost,
    )(onehot, *params)


if __name__ == "__main__":
    key = jax.random.PRNGKey(0)
    kx, kw = jax.random.split(key)
    x_idx = jax.random.randint(kx, (BATCH, SEQ, INPUT_SIZE), 0, NUM_CLASSES,
                               dtype=jnp.int32)
    params = init_params(kw)

    out = lstm_embed_ball_model(x_idx, params)
    jax.block_until_ready(out)
    assert out.shape == (BATCH, OUT_DIM)
    assert bool(jnp.all(jnp.isfinite(out)))
    print("KERNEL_OK")
</pallas_src>

<mosaic_0001>
module attributes {stable_mosaic.version = 11 : i64} {
  func.func @lstm_kernel(%arg0: memref<16x32xbf16, #tpu.memory_space<vmem>>, %arg1: memref<32x32xbf16, #tpu.memory_space<vmem>>, %arg2: memref<32x128xbf16, #tpu.memory_space<vmem>>, %arg3: memref<32x128xbf16, #tpu.memory_space<vmem>>, %arg4: memref<1x128xf32, #tpu.memory_space<vmem>>, %arg5: memref<32x128xbf16, #tpu.memory_space<vmem>>, %arg6: memref<32x128xbf16, #tpu.memory_space<vmem>>, %arg7: memref<1x128xf32, #tpu.memory_space<vmem>>, %arg8: memref<32x32xbf16, #tpu.memory_space<vmem>>, %arg9: memref<1x32xf32, #tpu.memory_space<vmem>>, %arg10: memref<2x32xf32, #tpu.memory_space<vmem>>) attributes {dimension_semantics = [], scalar_prefetch = 0 : i64, scratch_operands = 0 : i64, tpu.core_type = #tpu.core_type<tc>} {
    %c0 = arith.constant 0 : index
    %c0_0 = arith.constant 0 : index
    %0 = vector.load %arg0[%c0, %c0_0] : memref<16x32xbf16, #tpu.memory_space<vmem>>, vector<16x32xbf16>
    %c0_1 = arith.constant 0 : index
    %c0_2 = arith.constant 0 : index
    %1 = vector.load %arg1[%c0_1, %c0_2] : memref<32x32xbf16, #tpu.memory_space<vmem>>, vector<32x32xbf16>
    %cst = arith.constant dense<0.000000e+00> : vector<16x32xf32>
    %2 = tpu.matmul %0, %1, %cst {dimension_numbers = #tpu.dot_dimension_numbers<[1], [0], [0], [1], [0, 0, 1, 1], [], []>} : vector<16x32xbf16>, vector<32x32xbf16>, vector<16x32xf32> -> vector<16x32xf32>
    %3 = arith.truncf %2 : vector<16x32xf32> to vector<16x32xbf16>
    %c0_3 = arith.constant 0 : index
    %c0_4 = arith.constant 0 : index
    %4 = vector.load %arg2[%c0_3, %c0_4] : memref<32x128xbf16, #tpu.memory_space<vmem>>, vector<32x128xbf16>
    %cst_5 = arith.constant dense<0.000000e+00> : vector<16x128xf32>
    %5 = tpu.matmul %3, %4, %cst_5 {dimension_numbers = #tpu.dot_dimension_numbers<[1], [0], [0], [1], [0, 0, 1, 1], [], []>} : vector<16x32xbf16>, vector<32x128xbf16>, vector<16x128xf32> -> vector<16x128xf32>
    %c0_6 = arith.constant 0 : index
    %c0_7 = arith.constant 0 : index
    %6 = vector.load %arg4[%c0_6, %c0_7] : memref<1x128xf32, #tpu.memory_space<vmem>>, vector<1x128xf32>
    %7 = vector.broadcast %6 : vector<1x128xf32> to vector<16x128xf32>
    %8 = arith.addf %5, %7 : vector<16x128xf32>
    %cst_8 = arith.constant 0.000000e+00 : f32
    %9 = vector.broadcast %cst_8 : f32 to vector<2x32xf32>
    %cst_9 = arith.constant 0.000000e+00 : f32
    %10 = vector.broadcast %cst_9 : f32 to vector<2x32xf32>
    %11 = vector.extract_strided_slice %8 {offsets = [0, 0], sizes = [2, 128], strides = [1, 1]} : vector<16x128xf32> to vector<2x128xf32>
    %12 = arith.truncf %9 : vector<2x32xf32> to vector<2x32xbf16>
    %c0_10 = arith.constant 0 : index
    %c0_11 = arith.constant 0 : index
    %13 = vector.load %arg3[%c0_10, %c0_11] : memref<32x128xbf16, #tpu.memory_space<vmem>>, vector<32x128xbf16>
    %cst_12 = arith.constant dense<0.000000e+00> : vector<2x128xf32>
    %14 = tpu.matmul %12, %13, %cst_12 {dimension_numbers = #tpu.dot_dimension_numbers<[1], [0], [0], [1], [0, 0, 1, 1], [], []>} : vector<2x32xbf16>, vector<32x128xbf16>, vector<2x128xf32> -> vector<2x128xf32>
    %15 = arith.addf %11, %14 : vector<2x128xf32>
    %16 = vector.extract_strided_slice %15 {offsets = [0, 0], sizes = [2, 32], strides = [1, 1]} : vector<2x128xf32> to vector<2x32xf32>
    %17 = arith.negf %16 : vector<2x32xf32>
    %18 = math.exp %17 : vector<2x32xf32>
    %cst_13 = arith.constant 1.000000e+00 : f32
    %19 = vector.broadcast %cst_13 : f32 to vector<2x32xf32>
    %20 = arith.addf %19, %18 : vector<2x32xf32>
    %21 = arith.divf %19, %20 : vector<2x32xf32>
    %22 = vector.extract_strided_slice %15 {offsets = [0, 32], sizes = [2, 32], strides = [1, 1]} : vector<2x128xf32> to vector<2x32xf32>
    %23 = arith.negf %22 : vector<2x32xf32>
    %24 = math.exp %23 : vector<2x32xf32>
    %cst_14 = arith.constant 1.000000e+00 : f32
    %25 = vector.broadcast %cst_14 : f32 to vector<2x32xf32>
    %26 = arith.addf %25, %24 : vector<2x32xf32>
    %27 = arith.divf %25, %26 : vector<2x32xf32>
    %28 = vector.extract_strided_slice %15 {offsets = [0, 64], sizes = [2, 32], strides = [1, 1]} : vector<2x128xf32> to vector<2x32xf32>
    %29 = math.tanh %28 : vector<2x32xf32>
    %30 = vector.extract_strided_slice %15 {offsets = [0, 96], sizes = [2, 32], strides = [1, 1]} : vector<2x128xf32> to vector<2x32xf32>
    %31 = arith.negf %30 : vector<2x32xf32>
    %32 = math.exp %31 : vector<2x32xf32>
    %cst_15 = arith.constant 1.000000e+00 : f32
    %33 = vector.broadcast %cst_15 : f32 to vector<2x32xf32>
    %34 = arith.addf %33, %32 : vector<2x32xf32>
    %35 = arith.divf %33, %34 : vector<2x32xf32>
    %36 = arith.mulf %27, %10 : vector<2x32xf32>
    %37 = arith.mulf %21, %29 : vector<2x32xf32>
    %38 = arith.addf %36, %37 : vector<2x32xf32>
    %39 = math.tanh %38 : vector<2x32xf32>
    %40 = arith.mulf %35, %39 : vector<2x32xf32>
    %41 = vector.extract_strided_slice %8 {offsets = [2, 0], sizes = [2, 128], strides = [1, 1]} : vector<16x128xf32> to vector<2x128xf32>
    %42 = arith.truncf %40 : vector<2x32xf32> to vector<2x32xbf16>
    %c0_16 = arith.constant 0 : index
    %c0_17 = arith.constant 0 : index
    %43 = vector.load %arg3[%c0_16, %c0_17] : memref<32x128xbf16, #tpu.memory_space<vmem>>, vector<32x128xbf16>
    %cst_18 = arith.constant dense<0.000000e+00> : vector<2x128xf32>
    %44 = tpu.matmul %42, %43, %cst_18 {dimension_numbers = #tpu.dot_dimension_numbers<[1], [0], [0], [1], [0, 0, 1, 1], [], []>} : vector<2x32xbf16>, vector<32x128xbf16>, vector<2x128xf32> -> vector<2x128xf32>
    %45 = arith.addf %41, %44 : vector<2x128xf32>
    %46 = vector.extract_strided_slice %45 {offsets = [0, 0], sizes = [2, 32], strides = [1, 1]} : vector<2x128xf32> to vector<2x32xf32>
    %47 = arith.negf %46 : vector<2x32xf32>
    %48 = math.exp %47 : vector<2x32xf32>
    %cst_19 = arith.constant 1.000000e+00 : f32
    %49 = vector.broadcast %cst_19 : f32 to vector<2x32xf32>
    %50 = arith.addf %49, %48 : vector<2x32xf32>
    %51 = arith.divf %49, %50 : vector<2x32xf32>
    %52 = vector.extract_strided_slice %45 {offsets = [0, 32], sizes = [2, 32], strides = [1, 1]} : vector<2x128xf32> to vector<2x32xf32>
    %53 = arith.negf %52 : vector<2x32xf32>
    %54 = math.exp %53 : vector<2x32xf32>
    %cst_20 = arith.constant 1.000000e+00 : f32
    %55 = vector.broadcast %cst_20 : f32 to vector<2x32xf32>
    %56 = arith.addf %55, %54 : vector<2x32xf32>
    %57 = arith.divf %55, %56 : vector<2x32xf32>
    %58 = vector.extract_strided_slice %45 {offsets = [0, 64], sizes = [2, 32], strides = [1, 1]} : vector<2x128xf32> to vector<2x32xf32>
    %59 = math.tanh %58 : vector<2x32xf32>
    %60 = vector.extract_strided_slice %45 {offsets = [0, 96], sizes = [2, 32], strides = [1, 1]} : vector<2x128xf32> to vector<2x32xf32>
    %61 = arith.negf %60 : vector<2x32xf32>
    %62 = math.exp %61 : vector<2x32xf32>
    %cst_21 = arith.constant 1.000000e+00 : f32
    %63 = vector.broadcast %cst_21 : f32 to vector<2x32xf32>
    %64 = arith.addf %63, %62 : vector<2x32xf32>
    %65 = arith.divf %63, %64 : vector<2x32xf32>
    %66 = arith.mulf %57, %38 : vector<2x32xf32>
    %67 = arith.mulf %51, %59 : vector<2x32xf32>
    %68 = arith.addf %66, %67 : vector<2x32xf32>
    %69 = math.tanh %68 : vector<2x32xf32>
    %70 = arith.mulf %65, %69 : vector<2x32xf32>
    %71 = vector.extract_strided_slice %8 {offsets = [4, 0], sizes = [2, 128], strides = [1, 1]} : vector<16x128xf32> to vector<2x128xf32>
    %72 = arith.truncf %70 : vector<2x32xf32> to vector<2x32xbf16>
    %c0_22 = arith.constant 0 : index
    %c0_23 = arith.constant 0 : index
    %73 = vector.load %arg3[%c0_22, %c0_23] : memref<32x128xbf16, #tpu.memory_space<vmem>>, vector<32x128xbf16>
    %cst_24 = arith.constant dense<0.000000e+00> : vector<2x128xf32>
    %74 = tpu.matmul %72, %73, %cst_24 {dimension_numbers = #tpu.dot_dimension_numbers<[1], [0], [0], [1], [0, 0, 1, 1], [], []>} : vector<2x32xbf16>, vector<32x128xbf16>, vector<2x128xf32> -> vector<2x128xf32>
    %75 = arith.addf %71, %74 : vector<2x128xf32>
    %76 = vector.extract_strided_slice %75 {offsets = [0, 0], sizes = [2, 32], strides = [1, 1]} : vector<2x128xf32> to vector<2x32xf32>
    %77 = arith.negf %76 : vector<2x32xf32>
    %78 = math.exp %77 : vector<2x32xf32>
    %cst_25 = arith.constant 1.000000e+00 : f32
    %79 = vector.broadcast %cst_25 : f32 to vector<2x32xf32>
    %80 = arith.addf %79, %78 : vector<2x32xf32>
    %81 = arith.divf %79, %80 : vector<2x32xf32>
    %82 = vector.extract_strided_slice %75 {offsets = [0, 32], sizes = [2, 32], strides = [1, 1]} : vector<2x128xf32> to vector<2x32xf32>
    %83 = arith.negf %82 : vector<2x32xf32>
    %84 = math.exp %83 : vector<2x32xf32>
    %cst_26 = arith.constant 1.000000e+00 : f32
    %85 = vector.broadcast %cst_26 : f32 to vector<2x32xf32>
    %86 = arith.addf %85, %84 : vector<2x32xf32>
    %87 = arith.divf %85, %86 : vector<2x32xf32>
    %88 = vector.extract_strided_slice %75 {offsets = [0, 64], sizes = [2, 32], strides = [1, 1]} : vector<2x128xf32> to vector<2x32xf32>
    %89 = math.tanh %88 : vector<2x32xf32>
    %90 = vector.extract_strided_slice %75 {offsets = [0, 96], sizes = [2, 32], strides = [1, 1]} : vector<2x128xf32> to vector<2x32xf32>
    %91 = arith.negf %90 : vector<2x32xf32>
    %92 = math.exp %91 : vector<2x32xf32>
    %cst_27 = arith.constant 1.000000e+00 : f32
    %93 = vector.broadcast %cst_27 : f32 to vector<2x32xf32>
    %94 = arith.addf %93, %92 : vector<2x32xf32>
    %95 = arith.divf %93, %94 : vector<2x32xf32>
    %96 = arith.mulf %87, %68 : vector<2x32xf32>
    %97 = arith.mulf %81, %89 : vector<2x32xf32>
    %98 = arith.addf %96, %97 : vector<2x32xf32>
    %99 = math.tanh %98 : vector<2x32xf32>
    %100 = arith.mulf %95, %99 : vector<2x32xf32>
    %101 = vector.extract_strided_slice %8 {offsets = [6, 0], sizes = [2, 128], strides = [1, 1]} : vector<16x128xf32> to vector<2x128xf32>
    %102 = arith.truncf %100 : vector<2x32xf32> to vector<2x32xbf16>
    %c0_28 = arith.constant 0 : index
    %c0_29 = arith.constant 0 : index
    %103 = vector.load %arg3[%c0_28, %c0_29] : memref<32x128xbf16, #tpu.memory_space<vmem>>, vector<32x128xbf16>
    %cst_30 = arith.constant dense<0.000000e+00> : vector<2x128xf32>
    %104 = tpu.matmul %102, %103, %cst_30 {dimension_numbers = #tpu.dot_dimension_numbers<[1], [0], [0], [1], [0, 0, 1, 1], [], []>} : vector<2x32xbf16>, vector<32x128xbf16>, vector<2x128xf32> -> vector<2x128xf32>
    %105 = arith.addf %101, %104 : vector<2x128xf32>
    %106 = vector.extract_strided_slice %105 {offsets = [0, 0], sizes = [2, 32], strides = [1, 1]} : vector<2x128xf32> to vector<2x32xf32>
    %107 = arith.negf %106 : vector<2x32xf32>
    %108 = math.exp %107 : vector<2x32xf32>
    %cst_31 = arith.constant 1.000000e+00 : f32
    %109 = vector.broadcast %cst_31 : f32 to vector<2x32xf32>
    %110 = arith.addf %109, %108 : vector<2x32xf32>
    %111 = arith.divf %109, %110 : vector<2x32xf32>
    %112 = vector.extract_strided_slice %105 {offsets = [0, 32], sizes = [2, 32], strides = [1, 1]} : vector<2x128xf32> to vector<2x32xf32>
    %113 = arith.negf %112 : vector<2x32xf32>
    %114 = math.exp %113 : vector<2x32xf32>
    %cst_32 = arith.constant 1.000000e+00 : f32
    %115 = vector.broadcast %cst_32 : f32 to vector<2x32xf32>
    %116 = arith.addf %115, %114 : vector<2x32xf32>
    %117 = arith.divf %115, %116 : vector<2x32xf32>
    %118 = vector.extract_strided_slice %105 {offsets = [0, 64], sizes = [2, 32], strides = [1, 1]} : vector<2x128xf32> to vector<2x32xf32>
    %119 = math.tanh %118 : vector<2x32xf32>
    %120 = vector.extract_strided_slice %105 {offsets = [0, 96], sizes = [2, 32], strides = [1, 1]} : vector<2x128xf32> to vector<2x32xf32>
    %121 = arith.negf %120 : vector<2x32xf32>
    %122 = math.exp %121 : vector<2x32xf32>
    %cst_33 = arith.constant 1.000000e+00 : f32
    %123 = vector.broadcast %cst_33 : f32 to vector<2x32xf32>
    %124 = arith.addf %123, %122 : vector<2x32xf32>
    %125 = arith.divf %123, %124 : vector<2x32xf32>
    %126 = arith.mulf %117, %98 : vector<2x32xf32>
    %127 = arith.mulf %111, %119 : vector<2x32xf32>
    %128 = arith.addf %126, %127 : vector<2x32xf32>
    %129 = math.tanh %128 : vector<2x32xf32>
    %130 = arith.mulf %125, %129 : vector<2x32xf32>
    %131 = vector.extract_strided_slice %8 {offsets = [8, 0], sizes = [2, 128], strides = [1, 1]} : vector<16x128xf32> to vector<2x128xf32>
    %132 = arith.truncf %130 : vector<2x32xf32> to vector<2x32xbf16>
    %c0_34 = arith.constant 0 : index
    %c0_35 = arith.constant 0 : index
    %133 = vector.load %arg3[%c0_34, %c0_35] : memref<32x128xbf16, #tpu.memory_space<vmem>>, vector<32x128xbf16>
    %cst_36 = arith.constant dense<0.000000e+00> : vector<2x128xf32>
    %134 = tpu.matmul %132, %133, %cst_36 {dimension_numbers = #tpu.dot_dimension_numbers<[1], [0], [0], [1], [0, 0, 1, 1], [], []>} : vector<2x32xbf16>, vector<32x128xbf16>, vector<2x128xf32> -> vector<2x128xf32>
    %135 = arith.addf %131, %134 : vector<2x128xf32>
    %136 = vector.extract_strided_slice %135 {offsets = [0, 0], sizes = [2, 32], strides = [1, 1]} : vector<2x128xf32> to vector<2x32xf32>
    %137 = arith.negf %136 : vector<2x32xf32>
    %138 = math.exp %137 : vector<2x32xf32>
    %cst_37 = arith.constant 1.000000e+00 : f32
    %139 = vector.broadcast %cst_37 : f32 to vector<2x32xf32>
    %140 = arith.addf %139, %138 : vector<2x32xf32>
    %141 = arith.divf %139, %140 : vector<2x32xf32>
    %142 = vector.extract_strided_slice %135 {offsets = [0, 32], sizes = [2, 32], strides = [1, 1]} : vector<2x128xf32> to vector<2x32xf32>
    %143 = arith.negf %142 : vector<2x32xf32>
    %144 = math.exp %143 : vector<2x32xf32>
    %cst_38 = arith.constant 1.000000e+00 : f32
    %145 = vector.broadcast %cst_38 : f32 to vector<2x32xf32>
    %146 = arith.addf %145, %144 : vector<2x32xf32>
    %147 = arith.divf %145, %146 : vector<2x32xf32>
    %148 = vector.extract_strided_slice %135 {offsets = [0, 64], sizes = [2, 32], strides = [1, 1]} : vector<2x128xf32> to vector<2x32xf32>
    %149 = math.tanh %148 : vector<2x32xf32>
    %150 = vector.extract_strided_slice %135 {offsets = [0, 96], sizes = [2, 32], strides = [1, 1]} : vector<2x128xf32> to vector<2x32xf32>
    %151 = arith.negf %150 : vector<2x32xf32>
    %152 = math.exp %151 : vector<2x32xf32>
    %cst_39 = arith.constant 1.000000e+00 : f32
    %153 = vector.broadcast %cst_39 : f32 to vector<2x32xf32>
    %154 = arith.addf %153, %152 : vector<2x32xf32>
    %155 = arith.divf %153, %154 : vector<2x32xf32>
    %156 = arith.mulf %147, %128 : vector<2x32xf32>
    %157 = arith.mulf %141, %149 : vector<2x32xf32>
    %158 = arith.addf %156, %157 : vector<2x32xf32>
    %159 = math.tanh %158 : vector<2x32xf32>
    %160 = arith.mulf %155, %159 : vector<2x32xf32>
    %161 = vector.extract_strided_slice %8 {offsets = [10, 0], sizes = [2, 128], strides = [1, 1]} : vector<16x128xf32> to vector<2x128xf32>
    %162 = arith.truncf %160 : vector<2x32xf32> to vector<2x32xbf16>
    %c0_40 = arith.constant 0 : index
    %c0_41 = arith.constant 0 : index
    %163 = vector.load %arg3[%c0_40, %c0_41] : memref<32x128xbf16, #tpu.memory_space<vmem>>, vector<32x128xbf16>
    %cst_42 = arith.constant dense<0.000000e+00> : vector<2x128xf32>
    %164 = tpu.matmul %162, %163, %cst_42 {dimension_numbers = #tpu.dot_dimension_numbers<[1], [0], [0], [1], [0, 0, 1, 1], [], []>} : vector<2x32xbf16>, vector<32x128xbf16>, vector<2x128xf32> -> vector<2x128xf32>
    %165 = arith.addf %161, %164 : vector<2x128xf32>
    %166 = vector.extract_strided_slice %165 {offsets = [0, 0], sizes = [2, 32], strides = [1, 1]} : vector<2x128xf32> to vector<2x32xf32>
    %167 = arith.negf %166 : vector<2x32xf32>
    %168 = math.exp %167 : vector<2x32xf32>
    %cst_43 = arith.constant 1.000000e+00 : f32
    %169 = vector.broadcast %cst_43 : f32 to vector<2x32xf32>
    %170 = arith.addf %169, %168 : vector<2x32xf32>
    %171 = arith.divf %169, %170 : vector<2x32xf32>
    %172 = vector.extract_strided_slice %165 {offsets = [0, 32], sizes = [2, 32], strides = [1, 1]} : vector<2x128xf32> to vector<2x32xf32>
    %173 = arith.negf %172 : vector<2x32xf32>
    %174 = math.exp %173 : vector<2x32xf32>
    %cst_44 = arith.constant 1.000000e+00 : f32
    %175 = vector.broadcast %cst_44 : f32 to vector<2x32xf32>
    %176 = arith.addf %175, %174 : vector<2x32xf32>
    %177 = arith.divf %175, %176 : vector<2x32xf32>
    %178 = vector.extract_strided_slice %165 {offsets = [0, 64], sizes = [2, 32], strides = [1, 1]} : vector<2x128xf32> to vector<2x32xf32>
    %179 = math.tanh %178 : vector<2x32xf32>
    %180 = vector.extract_strided_slice %165 {offsets = [0, 96], sizes = [2, 32], strides = [1, 1]} : vector<2x128xf32> to vector<2x32xf32>
    %181 = arith.negf %180 : vector<2x32xf32>
    %182 = math.exp %181 : vector<2x32xf32>
    %cst_45 = arith.constant 1.000000e+00 : f32
    %183 = vector.broadcast %cst_45 : f32 to vector<2x32xf32>
    %184 = arith.addf %183, %182 : vector<2x32xf32>
    %185 = arith.divf %183, %184 : vector<2x32xf32>
    %186 = arith.mulf %177, %158 : vector<2x32xf32>
    %187 = arith.mulf %171, %179 : vector<2x32xf32>
    %188 = arith.addf %186, %187 : vector<2x32xf32>
    %189 = math.tanh %188 : vector<2x32xf32>
    %190 = arith.mulf %185, %189 : vector<2x32xf32>
    %191 = vector.extract_strided_slice %8 {offsets = [12, 0], sizes = [2, 128], strides = [1, 1]} : vector<16x128xf32> to vector<2x128xf32>
    %192 = arith.truncf %190 : vector<2x32xf32> to vector<2x32xbf16>
    %c0_46 = arith.constant 0 : index
    %c0_47 = arith.constant 0 : index
    %193 = vector.load %arg3[%c0_46, %c0_47] : memref<32x128xbf16, #tpu.memory_space<vmem>>, vector<32x128xbf16>
    %cst_48 = arith.constant dense<0.000000e+00> : vector<2x128xf32>
    %194 = tpu.matmul %192, %193, %cst_48 {dimension_numbers = #tpu.dot_dimension_numbers<[1], [0], [0], [1], [0, 0, 1, 1], [], []>} : vector<2x32xbf16>, vector<32x128xbf16>, vector<2x128xf32> -> vector<2x128xf32>
    %195 = arith.addf %191, %194 : vector<2x128xf32>
    %196 = vector.extract_strided_slice %195 {offsets = [0, 0], sizes = [2, 32], strides = [1, 1]} : vector<2x128xf32> to vector<2x32xf32>
    %197 = arith.negf %196 : vector<2x32xf32>
    %198 = math.exp %197 : vector<2x32xf32>
    %cst_49 = arith.constant 1.000000e+00 : f32
    %199 = vector.broadcast %cst_49 : f32 to vector<2x32xf32>
    %200 = arith.addf %199, %198 : vector<2x32xf32>
    %201 = arith.divf %199, %200 : vector<2x32xf32>
    %202 = vector.extract_strided_slice %195 {offsets = [0, 32], sizes = [2, 32], strides = [1, 1]} : vector<2x128xf32> to vector<2x32xf32>
    %203 = arith.negf %202 : vector<2x32xf32>
    %204 = math.exp %203 : vector<2x32xf32>
    %cst_50 = arith.constant 1.000000e+00 : f32
    %205 = vector.broadcast %cst_50 : f32 to vector<2x32xf32>
    %206 = arith.addf %205, %204 : vector<2x32xf32>
    %207 = arith.divf %205, %206 : vector<2x32xf32>
    %208 = vector.extract_strided_slice %195 {offsets = [0, 64], sizes = [2, 32], strides = [1, 1]} : vector<2x128xf32> to vector<2x32xf32>
    %209 = math.tanh %208 : vector<2x32xf32>
    %210 = vector.extract_strided_slice %195 {offsets = [0, 96], sizes = [2, 32], strides = [1, 1]} : vector<2x128xf32> to vector<2x32xf32>
    %211 = arith.negf %210 : vector<2x32xf32>
    %212 = math.exp %211 : vector<2x32xf32>
    %cst_51 = arith.constant 1.000000e+00 : f32
    %213 = vector.broadcast %cst_51 : f32 to vector<2x32xf32>
    %214 = arith.addf %213, %212 : vector<2x32xf32>
    %215 = arith.divf %213, %214 : vector<2x32xf32>
    %216 = arith.mulf %207, %188 : vector<2x32xf32>
    %217 = arith.mulf %201, %209 : vector<2x32xf32>
    %218 = arith.addf %216, %217 : vector<2x32xf32>
    %219 = math.tanh %218 : vector<2x32xf32>
    %220 = arith.mulf %215, %219 : vector<2x32xf32>
    %221 = vector.extract_strided_slice %8 {offsets = [14, 0], sizes = [2, 128], strides = [1, 1]} : vector<16x128xf32> to vector<2x128xf32>
    %222 = arith.truncf %220 : vector<2x32xf32> to vector<2x32xbf16>
    %c0_52 = arith.constant 0 : index
    %c0_53 = arith.constant 0 : index
    %223 = vector.load %arg3[%c0_52, %c0_53] : memref<32x128xbf16, #tpu.memory_space<vmem>>, vector<32x128xbf16>
    %cst_54 = arith.constant dense<0.000000e+00> : vector<2x128xf32>
    %224 = tpu.matmul %222, %223, %cst_54 {dimension_numbers = #tpu.dot_dimension_numbers<[1], [0], [0], [1], [0, 0, 1, 1], [], []>} : vector<2x32xbf16>, vector<32x128xbf16>, vector<2x128xf32> -> vector<2x128xf32>
    %225 = arith.addf %221, %224 : vector<2x128xf32>
    %226 = vector.extract_strided_slice %225 {offsets = [0, 0], sizes = [2, 32], strides = [1, 1]} : vector<2x128xf32> to vector<2x32xf32>
    %227 = arith.negf %226 : vector<2x32xf32>
    %228 = math.exp %227 : vector<2x32xf32>
    %cst_55 = arith.constant 1.000000e+00 : f32
    %229 = vector.broadcast %cst_55 : f32 to vector<2x32xf32>
    %230 = arith.addf %229, %228 : vector<2x32xf32>
    %231 = arith.divf %229, %230 : vector<2x32xf32>
    %232 = vector.extract_strided_slice %225 {offsets = [0, 32], sizes = [2, 32], strides = [1, 1]} : vector<2x128xf32> to vector<2x32xf32>
    %233 = arith.negf %232 : vector<2x32xf32>
    %234 = math.exp %233 : vector<2x32xf32>
    %cst_56 = arith.constant 1.000000e+00 : f32
    %235 = vector.broadcast %cst_56 : f32 to vector<2x32xf32>
    %236 = arith.addf %235, %234 : vector<2x32xf32>
    %237 = arith.divf %235, %236 : vector<2x32xf32>
    %238 = vector.extract_strided_slice %225 {offsets = [0, 64], sizes = [2, 32], strides = [1, 1]} : vector<2x128xf32> to vector<2x32xf32>
    %239 = math.tanh %238 : vector<2x32xf32>
    %240 = vector.extract_strided_slice %225 {offsets = [0, 96], sizes = [2, 32], strides = [1, 1]} : vector<2x128xf32> to vector<2x32xf32>
    %241 = arith.negf %240 : vector<2x32xf32>
    %242 = math.exp %241 : vector<2x32xf32>
    %cst_57 = arith.constant 1.000000e+00 : f32
    %243 = vector.broadcast %cst_57 : f32 to vector<2x32xf32>
    %244 = arith.addf %243, %242 : vector<2x32xf32>
    %245 = arith.divf %243, %244 : vector<2x32xf32>
    %246 = arith.mulf %237, %218 : vector<2x32xf32>
    %247 = arith.mulf %231, %239 : vector<2x32xf32>
    %248 = arith.addf %246, %247 : vector<2x32xf32>
    %249 = math.tanh %248 : vector<2x32xf32>
    %250 = arith.mulf %245, %249 : vector<2x32xf32>
    %251 = tpu.concatenate %40, %70, %100, %130, %160, %190, %220, %250 in 0 : vector<2x32xf32>, vector<2x32xf32>, vector<2x32xf32>, vector<2x32xf32>, vector<2x32xf32>, vector<2x32xf32>, vector<2x32xf32>, vector<2x32xf32> -> vector<16x32xf32>
    %252 = arith.truncf %251 : vector<16x32xf32> to vector<16x32xbf16>
    %c0_58 = arith.constant 0 : index
    %c0_59 = arith.constant 0 : index
    %253 = vector.load %arg5[%c0_58, %c0_59] : memref<32x128xbf16, #tpu.memory_space<vmem>>, vector<32x128xbf16>
    %cst_60 = arith.constant dense<0.000000e+00> : vector<16x128xf32>
    %254 = tpu.matmul %252, %253, %cst_60 {dimension_numbers = #tpu.dot_dimension_numbers<[1], [0], [0], [1], [0, 0, 1, 1], [], []>} : vector<16x32xbf16>, vector<32x128xbf16>, vector<16x128xf32> -> vector<16x128xf32>
    %c0_61 = arith.constant 0 : index
    %c0_62 = arith.constant 0 : index
    %255 = vector.load %arg7[%c0_61, %c0_62] : memref<1x128xf32, #tpu.memory_space<vmem>>, vector<1x128xf32>
    %256 = vector.broadcast %255 : vector<1x128xf32> to vector<16x128xf32>
    %257 = arith.addf %254, %256 : vector<16x128xf32>
    %cst_63 = arith.constant 0.000000e+00 : f32
    %258 = vector.broadcast %cst_63 : f32 to vector<2x32xf32>
    %cst_64 = arith.constant 0.000000e+00 : f32
    %259 = vector.broadcast %cst_64 : f32 to vector<2x32xf32>
    %260 = vector.extract_strided_slice %257 {offsets = [0, 0], sizes = [2, 128], strides = [1, 1]} : vector<16x128xf32> to vector<2x128xf32>
    %261 = arith.truncf %258 : vector<2x32xf32> to vector<2x32xbf16>
    %c0_65 = arith.constant 0 : index
    %c0_66 = arith.constant 0 : index
    %262 = vector.load %arg6[%c0_65, %c0_66] : memref<32x128xbf16, #tpu.memory_space<vmem>>, vector<32x128xbf16>
    %cst_67 = arith.constant dense<0.000000e+00> : vector<2x128xf32>
    %263 = tpu.matmul %261, %262, %cst_67 {dimension_numbers = #tpu.dot_dimension_numbers<[1], [0], [0], [1], [0, 0, 1, 1], [], []>} : vector<2x32xbf16>, vector<32x128xbf16>, vector<2x128xf32> -> vector<2x128xf32>
    %264 = arith.addf %260, %263 : vector<2x128xf32>
    %265 = vector.extract_strided_slice %264 {offsets = [0, 0], sizes = [2, 32], strides = [1, 1]} : vector<2x128xf32> to vector<2x32xf32>
    %266 = arith.negf %265 : vector<2x32xf32>
    %267 = math.exp %266 : vector<2x32xf32>
    %cst_68 = arith.constant 1.000000e+00 : f32
    %268 = vector.broadcast %cst_68 : f32 to vector<2x32xf32>
    %269 = arith.addf %268, %267 : vector<2x32xf32>
    %270 = arith.divf %268, %269 : vector<2x32xf32>
    %271 = vector.extract_strided_slice %264 {offsets = [0, 32], sizes = [2, 32], strides = [1, 1]} : vector<2x128xf32> to vector<2x32xf32>
    %272 = arith.negf %271 : vector<2x32xf32>
    %273 = math.exp %272 : vector<2x32xf32>
    %cst_69 = arith.constant 1.000000e+00 : f32
    %274 = vector.broadcast %cst_69 : f32 to vector<2x32xf32>
    %275 = arith.addf %274, %273 : vector<2x32xf32>
    %276 = arith.divf %274, %275 : vector<2x32xf32>
    %277 = vector.extract_strided_slice %264 {offsets = [0, 64], sizes = [2, 32], strides = [1, 1]} : vector<2x128xf32> to vector<2x32xf32>
    %278 = math.tanh %277 : vector<2x32xf32>
    %279 = vector.extract_strided_slice %264 {offsets = [0, 96], sizes = [2, 32], strides = [1, 1]} : vector<2x128xf32> to vector<2x32xf32>
    %280 = arith.negf %279 : vector<2x32xf32>
    %281 = math.exp %280 : vector<2x32xf32>
    %cst_70 = arith.constant 1.000000e+00 : f32
    %282 = vector.broadcast %cst_70 : f32 to vector<2x32xf32>
    %283 = arith.addf %282, %281 : vector<2x32xf32>
    %284 = arith.divf %282, %283 : vector<2x32xf32>
    %285 = arith.mulf %276, %259 : vector<2x32xf32>
    %286 = arith.mulf %270, %278 : vector<2x32xf32>
    %287 = arith.addf %285, %286 : vector<2x32xf32>
    %288 = math.tanh %287 : vector<2x32xf32>
    %289 = arith.mulf %284, %288 : vector<2x32xf32>
    %290 = vector.extract_strided_slice %257 {offsets = [2, 0], sizes = [2, 128], strides = [1, 1]} : vector<16x128xf32> to vector<2x128xf32>
    %291 = arith.truncf %289 : vector<2x32xf32> to vector<2x32xbf16>
    %c0_71 = arith.constant 0 : index
    %c0_72 = arith.constant 0 : index
    %292 = vector.load %arg6[%c0_71, %c0_72] : memref<32x128xbf16, #tpu.memory_space<vmem>>, vector<32x128xbf16>
    %cst_73 = arith.constant dense<0.000000e+00> : vector<2x128xf32>
    %293 = tpu.matmul %291, %292, %cst_73 {dimension_numbers = #tpu.dot_dimension_numbers<[1], [0], [0], [1], [0, 0, 1, 1], [], []>} : vector<2x32xbf16>, vector<32x128xbf16>, vector<2x128xf32> -> vector<2x128xf32>
    %294 = arith.addf %290, %293 : vector<2x128xf32>
    %295 = vector.extract_strided_slice %294 {offsets = [0, 0], sizes = [2, 32], strides = [1, 1]} : vector<2x128xf32> to vector<2x32xf32>
    %296 = arith.negf %295 : vector<2x32xf32>
    %297 = math.exp %296 : vector<2x32xf32>
    %cst_74 = arith.constant 1.000000e+00 : f32
    %298 = vector.broadcast %cst_74 : f32 to vector<2x32xf32>
    %299 = arith.addf %298, %297 : vector<2x32xf32>
    %300 = arith.divf %298, %299 : vector<2x32xf32>
    %301 = vector.extract_strided_slice %294 {offsets = [0, 32], sizes = [2, 32], strides = [1, 1]} : vector<2x128xf32> to vector<2x32xf32>
    %302 = arith.negf %301 : vector<2x32xf32>
    %303 = math.exp %302 : vector<2x32xf32>
    %cst_75 = arith.constant 1.000000e+00 : f32
    %304 = vector.broadcast %cst_75 : f32 to vector<2x32xf32>
    %305 = arith.addf %304, %303 : vector<2x32xf32>
    %306 = arith.divf %304, %305 : vector<2x32xf32>
    %307 = vector.extract_strided_slice %294 {offsets = [0, 64], sizes = [2, 32], strides = [1, 1]} : vector<2x128xf32> to vector<2x32xf32>
    %308 = math.tanh %307 : vector<2x32xf32>
    %309 = vector.extract_strided_slice %294 {offsets = [0, 96], sizes = [2, 32], strides = [1, 1]} : vector<2x128xf32> to vector<2x32xf32>
    %310 = arith.negf %309 : vector<2x32xf32>
    %311 = math.exp %310 : vector<2x32xf32>
    %cst_76 = arith.constant 1.000000e+00 : f32
    %312 = vector.broadcast %cst_76 : f32 to vector<2x32xf32>
    %313 = arith.addf %312, %311 : vector<2x32xf32>
    %314 = arith.divf %312, %313 : vector<2x32xf32>
    %315 = arith.mulf %306, %287 : vector<2x32xf32>
    %316 = arith.mulf %300, %308 : vector<2x32xf32>
    %317 = arith.addf %315, %316 : vector<2x32xf32>
    %318 = math.tanh %317 : vector<2x32xf32>
    %319 = arith.mulf %314, %318 : vector<2x32xf32>
    %320 = vector.extract_strided_slice %257 {offsets = [4, 0], sizes = [2, 128], strides = [1, 1]} : vector<16x128xf32> to vector<2x128xf32>
    %321 = arith.truncf %319 : vector<2x32xf32> to vector<2x32xbf16>
    %c0_77 = arith.constant 0 : index
    %c0_78 = arith.constant 0 : index
    %322 = vector.load %arg6[%c0_77, %c0_78] : memref<32x128xbf16, #tpu.memory_space<vmem>>, vector<32x128xbf16>
    %cst_79 = arith.constant dense<0.000000e+00> : vector<2x128xf32>
    %323 = tpu.matmul %321, %322, %cst_79 {dimension_numbers = #tpu.dot_dimension_numbers<[1], [0], [0], [1], [0, 0, 1, 1], [], []>} : vector<2x32xbf16>, vector<32x128xbf16>, vector<2x128xf32> -> vector<2x128xf32>
    %324 = arith.addf %320, %323 : vector<2x128xf32>
    %325 = vector.extract_strided_slice %324 {offsets = [0, 0], sizes = [2, 32], strides = [1, 1]} : vector<2x128xf32> to vector<2x32xf32>
    %326 = arith.negf %325 : vector<2x32xf32>
    %327 = math.exp %326 : vector<2x32xf32>
    %cst_80 = arith.constant 1.000000e+00 : f32
    %328 = vector.broadcast %cst_80 : f32 to vector<2x32xf32>
    %329 = arith.addf %328, %327 : vector<2x32xf32>
    %330 = arith.divf %328, %329 : vector<2x32xf32>
    %331 = vector.extract_strided_slice %324 {offsets = [0, 32], sizes = [2, 32], strides = [1, 1]} : vector<2x128xf32> to vector<2x32xf32>
    %332 = arith.negf %331 : vector<2x32xf32>
    %333 = math.exp %332 : vector<2x32xf32>
    %cst_81 = arith.constant 1.000000e+00 : f32
    %334 = vector.broadcast %cst_81 : f32 to vector<2x32xf32>
    %335 = arith.addf %334, %333 : vector<2x32xf32>
    %336 = arith.divf %334, %335 : vector<2x32xf32>
    %337 = vector.extract_strided_slice %324 {offsets = [0, 64], sizes = [2, 32], strides = [1, 1]} : vector<2x128xf32> to vector<2x32xf32>
    %338 = math.tanh %337 : vector<2x32xf32>
    %339 = vector.extract_strided_slice %324 {offsets = [0, 96], sizes = [2, 32], strides = [1, 1]} : vector<2x128xf32> to vector<2x32xf32>
    %340 = arith.negf %339 : vector<2x32xf32>
    %341 = math.exp %340 : vector<2x32xf32>
    %cst_82 = arith.constant 1.000000e+00 : f32
    %342 = vector.broadcast %cst_82 : f32 to vector<2x32xf32>
    %343 = arith.addf %342, %341 : vector<2x32xf32>
    %344 = arith.divf %342, %343 : vector<2x32xf32>
    %345 = arith.mulf %336, %317 : vector<2x32xf32>
    %346 = arith.mulf %330, %338 : vector<2x32xf32>
    %347 = arith.addf %345, %346 : vector<2x32xf32>
    %348 = math.tanh %347 : vector<2x32xf32>
    %349 = arith.mulf %344, %348 : vector<2x32xf32>
    %350 = vector.extract_strided_slice %257 {offsets = [6, 0], sizes = [2, 128], strides = [1, 1]} : vector<16x128xf32> to vector<2x128xf32>
    %351 = arith.truncf %349 : vector<2x32xf32> to vector<2x32xbf16>
    %c0_83 = arith.constant 0 : index
    %c0_84 = arith.constant 0 : index
    %352 = vector.load %arg6[%c0_83, %c0_84] : memref<32x128xbf16, #tpu.memory_space<vmem>>, vector<32x128xbf16>
    %cst_85 = arith.constant dense<0.000000e+00> : vector<2x128xf32>
    %353 = tpu.matmul %351, %352, %cst_85 {dimension_numbers = #tpu.dot_dimension_numbers<[1], [0], [0], [1], [0, 0, 1, 1], [], []>} : vector<2x32xbf16>, vector<32x128xbf16>, vector<2x128xf32> -> vector<2x128xf32>
    %354 = arith.addf %350, %353 : vector<2x128xf32>
    %355 = vector.extract_strided_slice %354 {offsets = [0, 0], sizes = [2, 32], strides = [1, 1]} : vector<2x128xf32> to vector<2x32xf32>
    %356 = arith.negf %355 : vector<2x32xf32>
    %357 = math.exp %356 : vector<2x32xf32>
    %cst_86 = arith.constant 1.000000e+00 : f32
    %358 = vector.broadcast %cst_86 : f32 to vector<2x32xf32>
    %359 = arith.addf %358, %357 : vector<2x32xf32>
    %360 = arith.divf %358, %359 : vector<2x32xf32>
    %361 = vector.extract_strided_slice %354 {offsets = [0, 32], sizes = [2, 32], strides = [1, 1]} : vector<2x128xf32> to vector<2x32xf32>
    %362 = arith.negf %361 : vector<2x32xf32>
    %363 = math.exp %362 : vector<2x32xf32>
    %cst_87 = arith.constant 1.000000e+00 : f32
    %364 = vector.broadcast %cst_87 : f32 to vector<2x32xf32>
    %365 = arith.addf %364, %363 : vector<2x32xf32>
    %366 = arith.divf %364, %365 : vector<2x32xf32>
    %367 = vector.extract_strided_slice %354 {offsets = [0, 64], sizes = [2, 32], strides = [1, 1]} : vector<2x128xf32> to vector<2x32xf32>
    %368 = math.tanh %367 : vector<2x32xf32>
    %369 = vector.extract_strided_slice %354 {offsets = [0, 96], sizes = [2, 32], strides = [1, 1]} : vector<2x128xf32> to vector<2x32xf32>
    %370 = arith.negf %369 : vector<2x32xf32>
    %371 = math.exp %370 : vector<2x32xf32>
    %cst_88 = arith.constant 1.000000e+00 : f32
    %372 = vector.broadcast %cst_88 : f32 to vector<2x32xf32>
    %373 = arith.addf %372, %371 : vector<2x32xf32>
    %374 = arith.divf %372, %373 : vector<2x32xf32>
    %375 = arith.mulf %366, %347 : vector<2x32xf32>
    %376 = arith.mulf %360, %368 : vector<2x32xf32>
    %377 = arith.addf %375, %376 : vector<2x32xf32>
    %378 = math.tanh %377 : vector<2x32xf32>
    %379 = arith.mulf %374, %378 : vector<2x32xf32>
    %380 = vector.extract_strided_slice %257 {offsets = [8, 0], sizes = [2, 128], strides = [1, 1]} : vector<16x128xf32> to vector<2x128xf32>
    %381 = arith.truncf %379 : vector<2x32xf32> to vector<2x32xbf16>
    %c0_89 = arith.constant 0 : index
    %c0_90 = arith.constant 0 : index
    %382 = vector.load %arg6[%c0_89, %c0_90] : memref<32x128xbf16, #tpu.memory_space<vmem>>, vector<32x128xbf16>
    %cst_91 = arith.constant dense<0.000000e+00> : vector<2x128xf32>
    %383 = tpu.matmul %381, %382, %cst_91 {dimension_numbers = #tpu.dot_dimension_numbers<[1], [0], [0], [1], [0, 0, 1, 1], [], []>} : vector<2x32xbf16>, vector<32x128xbf16>, vector<2x128xf32> -> vector<2x128xf32>
    %384 = arith.addf %380, %383 : vector<2x128xf32>
    %385 = vector.extract_strided_slice %384 {offsets = [0, 0], sizes = [2, 32], strides = [1, 1]} : vector<2x128xf32> to vector<2x32xf32>
    %386 = arith.negf %385 : vector<2x32xf32>
    %387 = math.exp %386 : vector<2x32xf32>
    %cst_92 = arith.constant 1.000000e+00 : f32
    %388 = vector.broadcast %cst_92 : f32 to vector<2x32xf32>
    %389 = arith.addf %388, %387 : vector<2x32xf32>
    %390 = arith.divf %388, %389 : vector<2x32xf32>
    %391 = vector.extract_strided_slice %384 {offsets = [0, 32], sizes = [2, 32], strides = [1, 1]} : vector<2x128xf32> to vector<2x32xf32>
    %392 = arith.negf %391 : vector<2x32xf32>
    %393 = math.exp %392 : vector<2x32xf32>
    %cst_93 = arith.constant 1.000000e+00 : f32
    %394 = vector.broadcast %cst_93 : f32 to vector<2x32xf32>
    %395 = arith.addf %394, %393 : vector<2x32xf32>
    %396 = arith.divf %394, %395 : vector<2x32xf32>
    %397 = vector.extract_strided_slice %384 {offsets = [0, 64], sizes = [2, 32], strides = [1, 1]} : vector<2x128xf32> to vector<2x32xf32>
    %398 = math.tanh %397 : vector<2x32xf32>
    %399 = vector.extract_strided_slice %384 {offsets = [0, 96], sizes = [2, 32], strides = [1, 1]} : vector<2x128xf32> to vector<2x32xf32>
    %400 = arith.negf %399 : vector<2x32xf32>
    %401 = math.exp %400 : vector<2x32xf32>
    %cst_94 = arith.constant 1.000000e+00 : f32
    %402 = vector.broadcast %cst_94 : f32 to vector<2x32xf32>
    %403 = arith.addf %402, %401 : vector<2x32xf32>
    %404 = arith.divf %402, %403 : vector<2x32xf32>
    %405 = arith.mulf %396, %377 : vector<2x32xf32>
    %406 = arith.mulf %390, %398 : vector<2x32xf32>
    %407 = arith.addf %405, %406 : vector<2x32xf32>
    %408 = math.tanh %407 : vector<2x32xf32>
    %409 = arith.mulf %404, %408 : vector<2x32xf32>
    %410 = vector.extract_strided_slice %257 {offsets = [10, 0], sizes = [2, 128], strides = [1, 1]} : vector<16x128xf32> to vector<2x128xf32>
    %411 = arith.truncf %409 : vector<2x32xf32> to vector<2x32xbf16>
    %c0_95 = arith.constant 0 : index
    %c0_96 = arith.constant 0 : index
    %412 = vector.load %arg6[%c0_95, %c0_96] : memref<32x128xbf16, #tpu.memory_space<vmem>>, vector<32x128xbf16>
    %cst_97 = arith.constant dense<0.000000e+00> : vector<2x128xf32>
    %413 = tpu.matmul %411, %412, %cst_97 {dimension_numbers = #tpu.dot_dimension_numbers<[1], [0], [0], [1], [0, 0, 1, 1], [], []>} : vector<2x32xbf16>, vector<32x128xbf16>, vector<2x128xf32> -> vector<2x128xf32>
    %414 = arith.addf %410, %413 : vector<2x128xf32>
    %415 = vector.extract_strided_slice %414 {offsets = [0, 0], sizes = [2, 32], strides = [1, 1]} : vector<2x128xf32> to vector<2x32xf32>
    %416 = arith.negf %415 : vector<2x32xf32>
    %417 = math.exp %416 : vector<2x32xf32>
    %cst_98 = arith.constant 1.000000e+00 : f32
    %418 = vector.broadcast %cst_98 : f32 to vector<2x32xf32>
    %419 = arith.addf %418, %417 : vector<2x32xf32>
    %420 = arith.divf %418, %419 : vector<2x32xf32>
    %421 = vector.extract_strided_slice %414 {offsets = [0, 32], sizes = [2, 32], strides = [1, 1]} : vector<2x128xf32> to vector<2x32xf32>
    %422 = arith.negf %421 : vector<2x32xf32>
    %423 = math.exp %422 : vector<2x32xf32>
    %cst_99 = arith.constant 1.000000e+00 : f32
    %424 = vector.broadcast %cst_99 : f32 to vector<2x32xf32>
    %425 = arith.addf %424, %423 : vector<2x32xf32>
    %426 = arith.divf %424, %425 : vector<2x32xf32>
    %427 = vector.extract_strided_slice %414 {offsets = [0, 64], sizes = [2, 32], strides = [1, 1]} : vector<2x128xf32> to vector<2x32xf32>
    %428 = math.tanh %427 : vector<2x32xf32>
    %429 = vector.extract_strided_slice %414 {offsets = [0, 96], sizes = [2, 32], strides = [1, 1]} : vector<2x128xf32> to vector<2x32xf32>
    %430 = arith.negf %429 : vector<2x32xf32>
    %431 = math.exp %430 : vector<2x32xf32>
    %cst_100 = arith.constant 1.000000e+00 : f32
    %432 = vector.broadcast %cst_100 : f32 to vector<2x32xf32>
    %433 = arith.addf %432, %431 : vector<2x32xf32>
    %434 = arith.divf %432, %433 : vector<2x32xf32>
    %435 = arith.mulf %426, %407 : vector<2x32xf32>
    %436 = arith.mulf %420, %428 : vector<2x32xf32>
    %437 = arith.addf %435, %436 : vector<2x32xf32>
    %438 = math.tanh %437 : vector<2x32xf32>
    %439 = arith.mulf %434, %438 : vector<2x32xf32>
    %440 = vector.extract_strided_slice %257 {offsets = [12, 0], sizes = [2, 128], strides = [1, 1]} : vector<16x128xf32> to vector<2x128xf32>
    %441 = arith.truncf %439 : vector<2x32xf32> to vector<2x32xbf16>
    %c0_101 = arith.constant 0 : index
    %c0_102 = arith.constant 0 : index
    %442 = vector.load %arg6[%c0_101, %c0_102] : memref<32x128xbf16, #tpu.memory_space<vmem>>, vector<32x128xbf16>
    %cst_103 = arith.constant dense<0.000000e+00> : vector<2x128xf32>
    %443 = tpu.matmul %441, %442, %cst_103 {dimension_numbers = #tpu.dot_dimension_numbers<[1], [0], [0], [1], [0, 0, 1, 1], [], []>} : vector<2x32xbf16>, vector<32x128xbf16>, vector<2x128xf32> -> vector<2x128xf32>
    %444 = arith.addf %440, %443 : vector<2x128xf32>
    %445 = vector.extract_strided_slice %444 {offsets = [0, 0], sizes = [2, 32], strides = [1, 1]} : vector<2x128xf32> to vector<2x32xf32>
    %446 = arith.negf %445 : vector<2x32xf32>
    %447 = math.exp %446 : vector<2x32xf32>
    %cst_104 = arith.constant 1.000000e+00 : f32
    %448 = vector.broadcast %cst_104 : f32 to vector<2x32xf32>
    %449 = arith.addf %448, %447 : vector<2x32xf32>
    %450 = arith.divf %448, %449 : vector<2x32xf32>
    %451 = vector.extract_strided_slice %444 {offsets = [0, 32], sizes = [2, 32], strides = [1, 1]} : vector<2x128xf32> to vector<2x32xf32>
    %452 = arith.negf %451 : vector<2x32xf32>
    %453 = math.exp %452 : vector<2x32xf32>
    %cst_105 = arith.constant 1.000000e+00 : f32
    %454 = vector.broadcast %cst_105 : f32 to vector<2x32xf32>
    %455 = arith.addf %454, %453 : vector<2x32xf32>
    %456 = arith.divf %454, %455 : vector<2x32xf32>
    %457 = vector.extract_strided_slice %444 {offsets = [0, 64], sizes = [2, 32], strides = [1, 1]} : vector<2x128xf32> to vector<2x32xf32>
    %458 = math.tanh %457 : vector<2x32xf32>
    %459 = vector.extract_strided_slice %444 {offsets = [0, 96], sizes = [2, 32], strides = [1, 1]} : vector<2x128xf32> to vector<2x32xf32>
    %460 = arith.negf %459 : vector<2x32xf32>
    %461 = math.exp %460 : vector<2x32xf32>
    %cst_106 = arith.constant 1.000000e+00 : f32
    %462 = vector.broadcast %cst_106 : f32 to vector<2x32xf32>
    %463 = arith.addf %462, %461 : vector<2x32xf32>
    %464 = arith.divf %462, %463 : vector<2x32xf32>
    %465 = arith.mulf %456, %437 : vector<2x32xf32>
    %466 = arith.mulf %450, %458 : vector<2x32xf32>
    %467 = arith.addf %465, %466 : vector<2x32xf32>
    %468 = math.tanh %467 : vector<2x32xf32>
    %469 = arith.mulf %464, %468 : vector<2x32xf32>
    %470 = vector.extract_strided_slice %257 {offsets = [14, 0], sizes = [2, 128], strides = [1, 1]} : vector<16x128xf32> to vector<2x128xf32>
    %471 = arith.truncf %469 : vector<2x32xf32> to vector<2x32xbf16>
    %c0_107 = arith.constant 0 : index
    %c0_108 = arith.constant 0 : index
    %472 = vector.load %arg6[%c0_107, %c0_108] : memref<32x128xbf16, #tpu.memory_space<vmem>>, vector<32x128xbf16>
    %cst_109 = arith.constant dense<0.000000e+00> : vector<2x128xf32>
    %473 = tpu.matmul %471, %472, %cst_109 {dimension_numbers = #tpu.dot_dimension_numbers<[1], [0], [0], [1], [0, 0, 1, 1], [], []>} : vector<2x32xbf16>, vector<32x128xbf16>, vector<2x128xf32> -> vector<2x128xf32>
    %474 = arith.addf %470, %473 : vector<2x128xf32>
    %475 = vector.extract_strided_slice %474 {offsets = [0, 0], sizes = [2, 32], strides = [1, 1]} : vector<2x128xf32> to vector<2x32xf32>
    %476 = arith.negf %475 : vector<2x32xf32>
    %477 = math.exp %476 : vector<2x32xf32>
    %cst_110 = arith.constant 1.000000e+00 : f32
    %478 = vector.broadcast %cst_110 : f32 to vector<2x32xf32>
    %479 = arith.addf %478, %477 : vector<2x32xf32>
    %480 = arith.divf %478, %479 : vector<2x32xf32>
    %481 = vector.extract_strided_slice %474 {offsets = [0, 32], sizes = [2, 32], strides = [1, 1]} : vector<2x128xf32> to vector<2x32xf32>
    %482 = arith.negf %481 : vector<2x32xf32>
    %483 = math.exp %482 : vector<2x32xf32>
    %cst_111 = arith.constant 1.000000e+00 : f32
    %484 = vector.broadcast %cst_111 : f32 to vector<2x32xf32>
    %485 = arith.addf %484, %483 : vector<2x32xf32>
    %486 = arith.divf %484, %485 : vector<2x32xf32>
    %487 = vector.extract_strided_slice %474 {offsets = [0, 64], sizes = [2, 32], strides = [1, 1]} : vector<2x128xf32> to vector<2x32xf32>
    %488 = math.tanh %487 : vector<2x32xf32>
    %489 = vector.extract_strided_slice %474 {offsets = [0, 96], sizes = [2, 32], strides = [1, 1]} : vector<2x128xf32> to vector<2x32xf32>
    %490 = arith.negf %489 : vector<2x32xf32>
    %491 = math.exp %490 : vector<2x32xf32>
    %cst_112 = arith.constant 1.000000e+00 : f32
    %492 = vector.broadcast %cst_112 : f32 to vector<2x32xf32>
    %493 = arith.addf %492, %491 : vector<2x32xf32>
    %494 = arith.divf %492, %493 : vector<2x32xf32>
    %495 = arith.mulf %486, %467 : vector<2x32xf32>
    %496 = arith.mulf %480, %488 : vector<2x32xf32>
    %497 = arith.addf %495, %496 : vector<2x32xf32>
    %498 = math.tanh %497 : vector<2x32xf32>
    %499 = arith.mulf %494, %498 : vector<2x32xf32>
    %500 = arith.truncf %499 : vector<2x32xf32> to vector<2x32xbf16>
    %c0_113 = arith.constant 0 : index
    %c0_114 = arith.constant 0 : index
    %501 = vector.load %arg8[%c0_113, %c0_114] : memref<32x32xbf16, #tpu.memory_space<vmem>>, vector<32x32xbf16>
    %cst_115 = arith.constant dense<0.000000e+00> : vector<2x32xf32>
    %502 = tpu.matmul %500, %501, %cst_115 {dimension_numbers = #tpu.dot_dimension_numbers<[1], [0], [0], [1], [0, 0, 1, 1], [], []>} : vector<2x32xbf16>, vector<32x32xbf16>, vector<2x32xf32> -> vector<2x32xf32>
    %c0_116 = arith.constant 0 : index
    %c0_117 = arith.constant 0 : index
    %503 = vector.load %arg9[%c0_116, %c0_117] : memref<1x32xf32, #tpu.memory_space<vmem>>, vector<1x32xf32>
    %504 = vector.broadcast %503 : vector<1x32xf32> to vector<2x32xf32>
    %505 = arith.addf %502, %504 : vector<2x32xf32>
    %c0_118 = arith.constant 0 : index
    %c0_119 = arith.constant 0 : index
    %506 = vector.load %arg10[%c0_118, %c0_119] : memref<2x32xf32, #tpu.memory_space<vmem>>, vector<2x32xf32>
    tpu.vector_store %arg10[%c0_118, %c0_119], %505 {strides = array<i32>} : memref<2x32xf32, #tpu.memory_space<vmem>>, vector<2x32xf32>,
    return
  }
}

</mosaic_0001>

<bundles_post_ra>
// kernel: lstm_embed_ball_model.1
= control target key start
LH: loop header
LB: loop body
LE: loop exit
PB: predicated region body
PF: predicated region fallthrough
CT: control target
= control target key end

     0   :  { %s1770_s0 = inlined_call_operand.vmem [shape: bf16[16,32], index: 0, kind: input, shape index: {}]   ;;  %s1771_s1 = inlined_call_operand.vmem [shape: bf16[32,32], index: 1, kind: input, shape index: {}]   ;;  %s1772_s2 = inlined_call_operand.vmem [shape: bf16[32,128], index: 2, kind: input, shape index: {}]   ;;  %s1773_s3 = inlined_call_operand.vmem [shape: bf16[32,128], index: 3, kind: input, shape index: {}]   ;;  %s1774_s4 = inlined_call_operand.vmem [shape: f32[1,128], index: 4, kind: input, shape index: {}]   ;;  %s1775_s5 = inlined_call_operand.vmem [shape: bf16[32,128], index: 5, kind: input, shape index: {}]   ;;  %s1776_s6 = inlined_call_operand.vmem [shape: bf16[32,128], index: 6, kind: input, shape index: {}]   ;;  %s1777_s7 = inlined_call_operand.vmem [shape: f32[1,128], index: 7, kind: input, shape index: {}]   ;;  %s1778_s8 = inlined_call_operand.vmem [shape: bf16[32,32], index: 8, kind: input, shape index: {}]   ;;  %s1779_s9 = inlined_call_operand.vmem [shape: f32[1,32], index: 9, kind: input, shape index: {}]   ;;  %s1780_s10 = inlined_call_operand.hbm [shape: f32[2,32], index: 10, kind: output, shape index: {}]  }
   0x1   :  { %v1350_v0 = vld [vmem:[%s1771_s1 + $0x8] sm:$0xff]  ;;  %v1349_v1 = vld [vmem:[%s1771_s1] sm:$0xff] }
   0x2   :  { %v1354_v2 = vld [vmem:[%s1773_s3 + $0x8] sm:$0xff]  ;;  %70 = vmatpush.bf16.msra.mxu0 %v1350_v0 }
   0x3   :  { %15 = vsyncpa [#allocation3], 0  ;;  %141 = vmatpush.bf16.msra.mxu2 %v1354_v2  ;;  %v1353_v3 = vld [vmem:[%s1773_s3] sm:$0xff]  ;;  %199 = vmatpush.bf16.msra.mxu3 %v1354_v2  ;;  %vm60_vm0 = vcmask 261120   ;;  %v1522_v5 = vmov 0   ;;  %v1352_v6 = vld [vmem:[%s1772_s2 + $0x8] sm:$0xff] }
   0x4   :  { %v1348_v4 = vld [vmem:[%s1770_s0] sm:$0xff]  ;;  %108 = vmatpush.bf16.msra.mxu1 %v1352_v6  ;;  %vm636_vm13 = vcmask 1041408   ;;  %vm638_vm14 = vcmask 1043456   ;;  %s1525_s19 = smov [#allocation2]  }
   0x5   :  { %v1351_v7 = vld [vmem:[%s1772_s2] sm:$0xff]  ;;  %s1523_s2 = smov 64   ;;  %s1251_s20 = sshll.u32 %s1525_s19, 4  ;;  %s1252_s20 = int_to_ptr.vmem [resolvable:$true] %s1251_s20 }
   0x6   :  { %71 = vmatpush.bf16.msra.mxu0 %v1349_v1  ;;  %v1608_v13 = vld [vmem:[%s1774_s4] ss:$0 sm:$0xff]  ;;  %s1524_s4 = smov 32  }
   0x7   :  { %142 = vmatpush.bf16.msra.mxu2 %v1353_v3  ;;  %200 = vmatpush.bf16.msra.mxu3 %v1353_v3 }
   0x8   :  { %109 = vmatpush.bf16.msra.mxu1 %v1351_v7 }
   0x9   :  { %1274 = vmatmul.msk.bf16.vlgmr.msra.gmra.mxu0 %vm60_vm0, %v1348_v4 }
   0xa   :  { %264 = vmatpush.bf16.msrb.mxu0 %v1354_v2  ;;  %143 = vmatmul.bf16.vlgmr.msra.gmra.mxu2 %v1522_v5 }
   0xb   :  { %394 = vmatpush.bf16.msrb.mxu2 %v1354_v2  ;;  %455 = vmatpush.bf16.msrb.mxu3 %v1354_v2 }
   0xc   :  { %329 = vmatpush.bf16.msrb.mxu1 %v1354_v2 }
   0xe   :  { %265 = vmatpush.bf16.msrb.mxu0 %v1353_v3 }
   0xf   :  { %395 = vmatpush.bf16.msrb.mxu2 %v1353_v3  ;;  %456 = vmatpush.bf16.msrb.mxu3 %v1353_v3 }
  0x10   :  { %330 = vmatpush.bf16.msrb.mxu1 %v1353_v3 }
  0x12   :  { %520 = vmatpush.bf16.msra.mxu0 %v1354_v2 }
  0x16   :  { %521 = vmatpush.bf16.msra.mxu0 %v1353_v3 }
  0x86   :  { %v73_v8 = vpop.f32.mrf.mxu0 }
  0x8d   :  { %v144_v9 = vpop.f32.mrf.mxu2 }
  0x8e   :  { %v75_v10 = vpop.f32.mrf.mxu0 }
  0x8f   :  { %v78_v11 = vpack.c.bf16 %v75_v10, %v73_v8 }
  0x91   :  { %1283 = vmatmul.msk.bf16.vlgmr.msra.gmra.mxu1 %vm60_vm0, %v78_v11 }
  0x92   :  { %585 = vmatpush.bf16.msra.mxu1 %v1354_v2 }
  0x95   :  { %v146_v12 = vpop.f32.mrf.mxu2 }
  0x96   :  { %586 = vmatpush.bf16.msra.mxu1 %v1353_v3 }
 0x10e   :  { %v111_v14 = vpop.f32.mrf.mxu1 }
 0x10f   :  { %v1611_v15 = vadd.f32 %v1608_v13, %v111_v14 }
 0x111   :  { %v148_v16 = vadd.f32 %v144_v9, %v1611_v15 }
 0x113   :  { %1368 = vtanh.f32 %v148_v16  ;;  %v1292_v18 = vmul.f32 -1.442695, %v148_v16 }
 0x115   :  { %1370 = vpow2.f32 %v1292_v18 }
 0x119   :  { %v1369_v17 = vpop.eup %1368 }
 0x11a   :  { %171 = vrot.lane.b32.xlu0 %v1369_v17, %s1523_s2 }
 0x11b   :  { %v1371_v19 = vpop.eup %1370 }
 0x11c   :  { %v152_v20 = vadd.f32 1.0, %v1371_v19 }
 0x11e   :  { %1372 = vrcp.f32 %v152_v20  ;;  %v164_v26 = vand.u32 2147483648, %v152_v20  ;;  %vm158_vm2 = vweird.f32 %v152_v20  ;;  %v162_v27 = vand.u32 2147483647, %v152_v20 }
 0x120   :  { %v165_v29 = vor.u32 1.1754944e-38, %v164_v26  ;;  %vm163_vm4 = vcmp.eq.f32.partialorder %v162_v27, 8.507059e+37 }
 0x124   :  { %v1373_v21 = vpop.eup %1372 }
 0x125   :  { %v154_v22 = vmul.f32 %v1373_v21, %v152_v20  ;;  %vm159_vm1 = vweird.f32 %v1373_v21 }
 0x126   :  { %vm160_vm3 = vmor %vm158_vm2, %vm159_vm1 }
 0x127   :  { %v155_v23 = vsub.f32 1.0, %v154_v22 }
 0x129   :  { %v156_v24 = vmul.f32 %v1373_v21, %v155_v23 }
 0x12b   :  { %v157_v25 = vadd.f32 %v1373_v21, %v156_v24 }
 0x12d   :  { %v161_v28 = vsel %vm160_vm3, %v1373_v21, %v157_v25 }
 0x12e   :  { %v166_v31 = vsel %vm163_vm4, %v165_v29, %v161_v28  ;;  %vm640_vm4 = vcmask 1045504  }
 0x12f   :  { %v169_v33 = vmul.f32 0.0, %v166_v31 }
 0x18c   :  { %v172_v30 = vpop.permute.xlu0 %171 }
 0x18d   :  { %v174_v32 = vmul.f32 %v172_v30, %v166_v31 }
 0x18f   :  { %176 = vrot.lane.b32.xlu0 %v174_v32, %s1524_s4 }
 0x201   :  { %v177_v34 = vpop.permute.xlu0 %176 }
 0x202   :  { %v179_v35 = vadd.f32 %v177_v34, %v169_v33 }
 0x204   :  { %1374 = vtanh.f32 %v179_v35  ;;  %v231_v61 = vrot.slane %v179_v35, 6 }
 0x20a   :  { %v1375_v36 = vpop.eup %1374 }
 0x20b   :  { %182 = vrot.lane.b32.xlu1 %v1375_v36, %s1523_s2 }
 0x27d   :  { %v183_v37 = vpop.permute.xlu1 %182 }
 0x27e   :  { %v1617_v38 = vmul.f32 %v183_v37, %v166_v31 }
 0x280   :  { %v186_v39 = vpack.c.bf16 %v1617_v38, %v1617_v38 }
 0x282   :  { %188 = vrot.lane.b32.xlu1 %v186_v39, %s1524_s4 }
 0x2f4   :  { %v189_v40 = vpop.permute.xlu1 %188 }
 0x2f5   :  { %1293 = vmatmul.msk.bf16.vlgmr.msra.gmra.mxu3 %vm60_vm0, %v189_v40 }
 0x378   :  { %v202_v41 = vpop.f32.mrf.mxu3 }
 0x379   :  { %v207_v42 = vrot.slane %v202_v41, 6 }
 0x37b   :  { %v209_v43 = vadd.f32 %v207_v42, %v1611_v15 }
 0x37d   :  { %1376 = vtanh.f32 %v209_v43  ;;  %v1294_v46 = vmul.f32 -1.442695, %v209_v43  ;;  %v113_v43 = vpop.f32.mrf.mxu1 }
 0x37f   :  { %1378 = vpow2.f32 %v1294_v46 }
 0x380   :  { %v204_v44 = vpop.f32.mrf.mxu3 }
 0x383   :  { %v1377_v45 = vpop.eup %1376 }
 0x384   :  { %235 = vrot.lane.b32.xlu2 %v1377_v45, %s1523_s2 }
 0x385   :  { %v1379_v47 = vpop.eup %1378 }
 0x386   :  { %v213_v48 = vadd.f32 1.0, %v1379_v47 }
 0x388   :  { %1380 = vrcp.f32 %v213_v48  ;;  %v225_v54 = vand.u32 2147483648, %v213_v48  ;;  %vm219_vm6 = vweird.f32 %v213_v48  ;;  %v223_v55 = vand.u32 2147483647, %v213_v48 }
 0x38a   :  { %v226_v57 = vor.u32 1.1754944e-38, %v225_v54  ;;  %vm224_vm8 = vcmp.eq.f32.partialorder %v223_v55, 8.507059e+37 }
 0x38e   :  { %v1381_v49 = vpop.eup %1380 }
 0x38f   :  { %v215_v50 = vmul.f32 %v1381_v49, %v213_v48  ;;  %vm220_vm5 = vweird.f32 %v1381_v49 }
 0x390   :  { %vm221_vm7 = vmor %vm219_vm6, %vm220_vm5 }
 0x391   :  { %v216_v51 = vsub.f32 1.0, %v215_v50 }
 0x393   :  { %v217_v52 = vmul.f32 %v1381_v49, %v216_v51 }
 0x395   :  { %v218_v53 = vadd.f32 %v1381_v49, %v217_v52 }
 0x397   :  { %v222_v56 = vsel %vm221_vm7, %v1381_v49, %v218_v53 }
 0x398   :  { %v227_v59 = vsel %vm224_vm8, %v226_v57, %v222_v56 }
 0x399   :  { %v233_v62 = vmul.f32 %v231_v61, %v227_v59 }
 0x3de   :  { %v236_v58 = vpop.permute.xlu2 %235 }
 0x3df   :  { %v238_v60 = vmul.f32 %v236_v58, %v227_v59 }
 0x3e1   :  { %240 = vrot.lane.b32.xlu2 %v238_v60, %s1524_s4 }
 0x43b   :  { %v241_v63 = vpop.permute.xlu2 %240 }
 0x43c   :  { %v243_v0 = vadd.f32 %v241_v63, %v233_v62 }
 0x43e   :  { %1382 = vtanh.f32 %v243_v0  ;;  %v296_v30 = vrot.slane %v243_v0, 6 }
 0x444   :  { %v1383_v1 = vpop.eup %1382 }
 0x445   :  { %246 = vrot.lane.b32.xlu0 %v1383_v1, %s1523_s2 }
 0x4b7   :  { %v247_v2 = vpop.permute.xlu0 %246 }
 0x4b8   :  { %v249_v3 = vmul.f32 %v247_v2, %v227_v59 }
 0x4ba   :  { %v250_v4 = vpack.c.bf16 %v249_v3, %v249_v3  ;;  %v637_v37 = vsel %vm636_vm13, %v1617_v38, %v249_v3 }
 0x4bc   :  { %v252_v6 = vrot.slane %v250_v4, 1 }
 0x4be   :  { %253 = vrot.lane.b32.xlu1 %v252_v6, %s1524_s4 }
 0x530   :  { %v254_v7 = vpop.permute.xlu1 %253 }
 0x531   :  { %1295 = vmatmul.msk.bf16.vlgmr.msrb.gmra.mxu0 %vm60_vm0, %v254_v7 }
 0x5ae   :  { %v267_v8 = vpop.f32.mrf.mxu0 }
 0x5af   :  { %v272_v9 = vrot.slane %v267_v8, 4 }
 0x5b1   :  { %v274_v10 = vadd.f32 %v272_v9, %v1611_v15 }
 0x5b3   :  { %1384 = vtanh.f32 %v274_v10  ;;  %v1296_v14 = vmul.f32 -1.442695, %v274_v10  ;;  %v1648_v10 = vadd.f32 %v1608_v13, %v113_v43 }
 0x5b5   :  { %1386 = vpow2.f32 %v1296_v14 }
 0x5b6   :  { %v269_v11 = vpop.f32.mrf.mxu0 }
 0x5b9   :  { %v1385_v12 = vpop.eup %1384 }
 0x5ba   :  { %300 = vrot.lane.b32.xlu2 %v1385_v12, %s1523_s2 }
 0x5bb   :  { %v1387_v16 = vpop.eup %1386 }
 0x5bc   :  { %v278_v17 = vadd.f32 1.0, %v1387_v16 }
 0x5be   :  { %1388 = vrcp.f32 %v278_v17  ;;  %v290_v23 = vand.u32 2147483648, %v278_v17  ;;  %vm284_vm10 = vweird.f32 %v278_v17  ;;  %v288_v24 = vand.u32 2147483647, %v278_v17 }
 0x5c0   :  { %v291_v26 = vor.u32 1.1754944e-38, %v290_v23  ;;  %vm289_vm12 = vcmp.eq.f32.partialorder %v288_v24, 8.507059e+37 }
 0x5c4   :  { %v1389_v18 = vpop.eup %1388 }
 0x5c5   :  { %v280_v19 = vmul.f32 %v1389_v18, %v278_v17  ;;  %vm285_vm9 = vweird.f32 %v1389_v18 }
 0x5c6   :  { %vm286_vm11 = vmor %vm284_vm10, %vm285_vm9 }
 0x5c7   :  { %v281_v20 = vsub.f32 1.0, %v280_v19 }
 0x5c9   :  { %v282_v21 = vmul.f32 %v1389_v18, %v281_v20 }
 0x5cb   :  { %v283_v22 = vadd.f32 %v1389_v18, %v282_v21 }
 0x5cd   :  { %v287_v25 = vsel %vm286_vm11, %v1389_v18, %v283_v22 }
 0x5ce   :  { %v292_v28 = vsel %vm289_vm12, %v291_v26, %v287_v25 }
 0x5cf   :  { %v298_v31 = vmul.f32 %v296_v30, %v292_v28 }
 0x614   :  { %v301_v27 = vpop.permute.xlu2 %300 }
 0x615   :  { %v303_v29 = vmul.f32 %v301_v27, %v292_v28 }
 0x617   :  { %305 = vrot.lane.b32.xlu0 %v303_v29, %s1524_s4 }
 0x689   :  { %v306_v32 = vpop.permute.xlu0 %305 }
 0x68a   :  { %v308_v33 = vadd.f32 %v306_v32, %v298_v31 }
 0x68c   :  { %1390 = vtanh.f32 %v308_v33  ;;  %v361_v62 = vrot.slane %v308_v33, 6 }
 0x692   :  { %v1391_v34 = vpop.eup %1390 }
 0x693   :  { %311 = vrot.lane.b32.xlu1 %v1391_v34, %s1523_s2 }
 0x705   :  { %v312_v35 = vpop.permute.xlu1 %311 }
 0x706   :  { %v314_v36 = vmul.f32 %v312_v35, %v292_v28 }
 0x708   :  { %v315_v39 = vpack.c.bf16 %v314_v36, %v314_v36  ;;  %v639_v40 = vsel %vm638_vm14, %v637_v37, %v314_v36 }
 0x70a   :  { %v317_v41 = vrot.slane %v315_v39, 2 }
 0x70c   :  { %318 = vrot.lane.b32.xlu2 %v317_v41, %s1524_s4 }
 0x766   :  { %v319_v42 = vpop.permute.xlu2 %318 }
 0x767   :  { %1297 = vmatmul.msk.bf16.vlgmr.msrb.gmra.mxu1 %vm60_vm0, %v319_v42 }
 0x7e4   :  { %v332_v44 = vpop.f32.mrf.mxu1 }
 0x7e5   :  { %v337_v45 = vrot.slane %v332_v44, 2 }
 0x7e7   :  { %v339_v46 = vadd.f32 %v337_v45, %v1611_v15 }
 0x7e9   :  { %1392 = vtanh.f32 %v339_v46  ;;  %v1298_v38 = vmul.f32 -1.442695, %v339_v46 }
 0x7eb   :  { %1394 = vpow2.f32 %v1298_v38 }
 0x7ec   :  { %v334_v47 = vpop.f32.mrf.mxu1 }
 0x7ef   :  { %v1393_v48 = vpop.eup %1392 }
 0x7f0   :  { %365 = vrot.lane.b32.xlu0 %v1393_v48, %s1523_s2 }
 0x7f1   :  { %v1395_v49 = vpop.eup %1394 }
 0x7f2   :  { %v343_v50 = vadd.f32 1.0, %v1395_v49 }
 0x7f4   :  { %1396 = vrcp.f32 %v343_v50  ;;  %v355_v56 = vand.u32 2147483648, %v343_v50  ;;  %vm349_vm1 = vweird.f32 %v343_v50  ;;  %v353_v57 = vand.u32 2147483647, %v343_v50 }
 0x7f6   :  { %v356_v58 = vor.u32 1.1754944e-38, %v355_v56  ;;  %vm354_vm3 = vcmp.eq.f32.partialorder %v353_v57, 8.507059e+37 }
 0x7fa   :  { %v1397_v51 = vpop.eup %1396 }
 0x7fb   :  { %v345_v52 = vmul.f32 %v1397_v51, %v343_v50  ;;  %vm350_vm15 = vweird.f32 %v1397_v51 }
 0x7fc   :  { %vm351_vm2 = vmor %vm349_vm1, %vm350_vm15 }
 0x7fd   :  { %v346_v53 = vsub.f32 1.0, %v345_v52 }
 0x7ff   :  { %v347_v54 = vmul.f32 %v1397_v51, %v346_v53 }
 0x801   :  { %v348_v55 = vadd.f32 %v1397_v51, %v347_v54 }
 0x803   :  { %v352_v15 = vsel %vm351_vm2, %v1397_v51, %v348_v55 }
 0x804   :  { %v357_v60 = vsel %vm354_vm3, %v356_v58, %v352_v15 }
 0x805   :  { %v363_v63 = vmul.f32 %v361_v62, %v357_v60 }
 0x862   :  { %v366_v59 = vpop.permute.xlu0 %365 }
 0x863   :  { %v368_v61 = vmul.f32 %v366_v59, %v357_v60 }
 0x865   :  { %370 = vrot.lane.b32.xlu1 %v368_v61, %s1524_s4 }
 0x8d7   :  { %v371_v0 = vpop.permute.xlu1 %370 }
 0x8d8   :  { %v373_v1 = vadd.f32 %v371_v0, %v363_v63 }
 0x8da   :  { %1398 = vtanh.f32 %v373_v1  ;;  %v423_v31 = vrot.slane %v373_v1, 6 }
 0x8e0   :  { %v1399_v2 = vpop.eup %1398 }
 0x8e1   :  { %376 = vrot.lane.b32.xlu2 %v1399_v2, %s1523_s2 }
 0x93b   :  { %v377_v3 = vpop.permute.xlu2 %376 }
 0x93c   :  { %v379_v4 = vmul.f32 %v377_v3, %v357_v60 }
 0x93e   :  { %v380_v6 = vpack.c.bf16 %v379_v4, %v379_v4  ;;  %v1643_v7 = vsel %vm640_vm4, %v639_v40, %v379_v4 }
 0x940   :  { %v382_v8 = vrot.slane %v380_v6, 3 }
 0x942   :  { %383 = vrot.lane.b32.xlu0 %v382_v8, %s1524_s4 }
 0x9b4   :  { %v384_v9 = vpop.permute.xlu0 %383 }
 0x9b5   :  { %1299 = vmatmul.msk.bf16.vlgmr.msrb.gmra.mxu2 %vm60_vm0, %v384_v9 }
 0xa38   :  { %v397_v11 = vpop.f32.mrf.mxu2 }
 0xa39   :  { %v401_v12 = vadd.f32 %v397_v11, %v1648_v10 }
 0xa3b   :  { %1400 = vtanh.f32 %v401_v12  ;;  %v1300_v17 = vmul.f32 -1.442695, %v401_v12 }
 0xa3d   :  { %1402 = vpow2.f32 %v1300_v17 }
 0xa40   :  { %v399_v14 = vpop.f32.mrf.mxu2 }
 0xa41   :  { %v1401_v16 = vpop.eup %1400 }
 0xa42   :  { %427 = vrot.lane.b32.xlu1 %v1401_v16, %s1523_s2 }
 0xa43   :  { %v1403_v18 = vpop.eup %1402 }
 0xa44   :  { %v405_v19 = vadd.f32 1.0, %v1403_v18 }
 0xa46   :  { %1404 = vrcp.f32 %v405_v19  ;;  %v417_v13 = vand.u32 2147483648, %v405_v19  ;;  %vm411_vm6 = vweird.f32 %v405_v19  ;;  %v415_v25 = vand.u32 2147483647, %v405_v19 }
 0xa48   :  { %v418_v27 = vor.u32 1.1754944e-38, %v417_v13  ;;  %vm416_vm8 = vcmp.eq.f32.partialorder %v415_v25, 8.507059e+37 }
 0xa4c   :  { %v1405_v20 = vpop.eup %1404 }
 0xa4d   :  { %v407_v21 = vmul.f32 %v1405_v20, %v405_v19  ;;  %vm412_vm5 = vweird.f32 %v1405_v20 }
 0xa4e   :  { %vm413_vm7 = vmor %vm411_vm6, %vm412_vm5 }
 0xa4f   :  { %v408_v22 = vsub.f32 1.0, %v407_v21 }
 0xa51   :  { %v409_v23 = vmul.f32 %v1405_v20, %v408_v22 }
 0xa53   :  { %v410_v24 = vadd.f32 %v1405_v20, %v409_v23 }
 0xa55   :  { %v414_v26 = vsel %vm413_vm7, %v1405_v20, %v410_v24 }
 0xa56   :  { %v419_v29 = vsel %vm416_vm8, %v418_v27, %v414_v26 }
 0xa57   :  { %v425_v32 = vmul.f32 %v423_v31, %v419_v29 }
 0xab4   :  { %v428_v28 = vpop.permute.xlu1 %427 }
 0xab5   :  { %v430_v30 = vmul.f32 %v428_v28, %v419_v29 }
 0xab7   :  { %432 = vrot.lane.b32.xlu2 %v430_v30, %s1524_s4 }
 0xb11   :  { %v433_v33 = vpop.permute.xlu2 %432 }
 0xb12   :  { %v435_v34 = vadd.f32 %v433_v33, %v425_v32 }
 0xb14   :  { %1406 = vtanh.f32 %v435_v34  ;;  %v487_v59 = vrot.slane %v435_v34, 6 }
 0xb1a   :  { %v1407_v35 = vpop.eup %1406 }
 0xb1b   :  { %438 = vrot.lane.b32.xlu0 %v1407_v35, %s1523_s2 }
 0xb8d   :  { %v439_v36 = vpop.permute.xlu0 %438 }
 0xb8e   :  { %v1654_v37 = vmul.f32 %v439_v36, %v419_v29 }
 0xb90   :  { %v442_v39 = vpack.c.bf16 %v1654_v37, %v1654_v37 }
 0xb92   :  { %444 = vrot.lane.b32.xlu1 %v442_v39, %s1524_s4 }
 0xc04   :  { %v445_v40 = vpop.permute.xlu1 %444 }
 0xc05   :  { %1301 = vmatmul.msk.bf16.vlgmr.msrb.gmra.mxu3 %vm60_vm0, %v445_v40 }
 0xc88   :  { %v458_v41 = vpop.f32.mrf.mxu3 }
 0xc89   :  { %v463_v42 = vrot.slane %v458_v41, 6 }
 0xc8b   :  { %v465_v43 = vadd.f32 %v463_v42, %v1648_v10 }
 0xc8d   :  { %1408 = vtanh.f32 %v465_v43  ;;  %v1302_v46 = vmul.f32 -1.442695, %v465_v43 }
 0xc8f   :  { %1410 = vpow2.f32 %v1302_v46 }
 0xc90   :  { %v460_v44 = vpop.f32.mrf.mxu3 }
 0xc93   :  { %v1409_v45 = vpop.eup %1408 }
 0xc94   :  { %491 = vrot.lane.b32.xlu2 %v1409_v45, %s1523_s2 }
 0xc95   :  { %v1411_v47 = vpop.eup %1410 }
 0xc96   :  { %v469_v48 = vadd.f32 1.0, %v1411_v47 }
 0xc98   :  { %1412 = vrcp.f32 %v469_v48  ;;  %v481_v53 = vand.u32 2147483648, %v469_v48  ;;  %vm475_vm10 = vweird.f32 %v469_v48  ;;  %v479_v54 = vand.u32 2147483647, %v469_v48 }
 0xc9a   :  { %v482_v56 = vor.u32 1.1754944e-38, %v481_v53  ;;  %vm480_vm12 = vcmp.eq.f32.partialorder %v479_v54, 8.507059e+37 }
 0xc9e   :  { %v1413_v38 = vpop.eup %1412 }
 0xc9f   :  { %v471_v49 = vmul.f32 %v1413_v38, %v469_v48  ;;  %vm476_vm9 = vweird.f32 %v1413_v38 }
 0xca0   :  { %vm477_vm11 = vmor %vm475_vm10, %vm476_vm9 }
 0xca1   :  { %v472_v50 = vsub.f32 1.0, %v471_v49 }
 0xca3   :  { %v473_v51 = vmul.f32 %v1413_v38, %v472_v50 }
 0xca5   :  { %v474_v52 = vadd.f32 %v1413_v38, %v473_v51 }
 0xca7   :  { %v478_v55 = vsel %vm477_vm11, %v1413_v38, %v474_v52 }
 0xca8   :  { %v483_v15 = vsel %vm480_vm12, %v482_v56, %v478_v55 }
 0xca9   :  { %v489_v60 = vmul.f32 %v487_v59, %v483_v15 }
 0xcee   :  { %v492_v57 = vpop.permute.xlu2 %491 }
 0xcef   :  { %v494_v58 = vmul.f32 %v492_v57, %v483_v15 }
 0xcf1   :  { %496 = vrot.lane.b32.xlu0 %v494_v58, %s1524_s4 }
 0xd63   :  { %v497_v61 = vpop.permute.xlu0 %496 }
 0xd64   :  { %v499_v62 = vadd.f32 %v497_v61, %v489_v60 }
 0xd66   :  { %1414 = vtanh.f32 %v499_v62  ;;  %v552_v29 = vrot.slane %v499_v62, 6 }
 0xd6c   :  { %v1415_v63 = vpop.eup %1414 }
 0xd6d   :  { %502 = vrot.lane.b32.xlu1 %v1415_v63, %s1523_s2 }
 0xddf   :  { %v503_v0 = vpop.permute.xlu1 %502 }
 0xde0   :  { %v505_v1 = vmul.f32 %v503_v0, %v483_v15  ;;  %v1356_v0 = vld [vmem:[%s1775_s5 + $0x8] sm:$0xff] }
 0xde1   :  { %678 = vmatpush.bf16.msra.mxu2 %v1356_v0 }
 0xde2   :  { %v506_v2 = vpack.c.bf16 %v505_v1, %v505_v1  ;;  %v642_v36 = vsel %vm636_vm13, %v1654_v37, %v505_v1  ;;  %v1358_v1 = vld [vmem:[%s1776_s6 + $0x8] sm:$0xff] }
 0xde3   :  { %708 = vmatpush.bf16.msra.mxu3 %v1358_v1  ;;  %766 = vmatpush.bf16.msrb.mxu0 %v1358_v1 }
 0xde4   :  { %v508_v3 = vrot.slane %v506_v2, 1  ;;  %v1357_v2 = vld [vmem:[%s1776_s6] sm:$0xff]  ;;  %831 = vmatpush.bf16.msrb.mxu1 %v1358_v1 }
 0xde6   :  { %509 = vrot.lane.b32.xlu2 %v508_v3, %s1524_s4  ;;  %v1355_v3 = vld [vmem:[%s1775_s5] sm:$0xff] }
 0xde7   :  { %709 = vmatpush.bf16.msra.mxu3 %v1357_v2  ;;  %679 = vmatpush.bf16.msra.mxu2 %v1355_v3 }
 0xde8   :  { %767 = vmatpush.bf16.msrb.mxu0 %v1357_v2  ;;  %832 = vmatpush.bf16.msrb.mxu1 %v1357_v2 }
 0xdea   :  { %710 = vmatmul.bf16.vlgmr.msra.gmra.mxu3 %v1522_v5 }
 0xdeb   :  { %896 = vmatpush.bf16.msrb.mxu2 %v1358_v1  ;;  %961 = vmatpush.bf16.msrb.mxu3 %v1358_v1 }
 0xdef   :  { %897 = vmatpush.bf16.msrb.mxu2 %v1357_v2  ;;  %962 = vmatpush.bf16.msrb.mxu3 %v1357_v2 }
 0xe40   :  { %v510_v4 = vpop.permute.xlu2 %509 }
 0xe41   :  { %1303 = vmatmul.msk.bf16.vlgmr.msra.gmra.mxu0 %vm60_vm0, %v510_v4 }
 0xe42   :  { %1022 = vmatpush.bf16.msra.mxu0 %v1358_v1 }
 0xe46   :  { %1023 = vmatpush.bf16.msra.mxu0 %v1357_v2 }
 0xebe   :  { %v523_v6 = vpop.f32.mrf.mxu0 }
 0xebf   :  { %v528_v8 = vrot.slane %v523_v6, 4 }
 0xec1   :  { %v530_v9 = vadd.f32 %v528_v8, %v1648_v10 }
 0xec3   :  { %1416 = vtanh.f32 %v530_v9  ;;  %v1304_v14 = vmul.f32 -1.442695, %v530_v9 }
 0xec5   :  { %1418 = vpow2.f32 %v1304_v14  ;;  %v1702_v14 = vld [vmem:[%s1777_s7] ss:$0 sm:$0xff] }
 0xec6   :  { %v525_v11 = vpop.f32.mrf.mxu0 }
 0xec7   :  { %v711_v11 = vpop.f32.mrf.mxu3 }
 0xec9   :  { %v1417_v12 = vpop.eup %1416 }
 0xeca   :  { %556 = vrot.lane.b32.xlu0 %v1417_v12, %s1523_s2 }
 0xecb   :  { %v1419_v16 = vpop.eup %1418 }
 0xecc   :  { %v534_v17 = vadd.f32 1.0, %v1419_v16 }
 0xece   :  { %1420 = vrcp.f32 %v534_v17  ;;  %v546_v23 = vand.u32 2147483648, %v534_v17  ;;  %vm540_vm1 = vweird.f32 %v534_v17  ;;  %v544_v24 = vand.u32 2147483647, %v534_v17 }
 0xecf   :  { %v713_v5 = vpop.f32.mrf.mxu3 }
 0xed0   :  { %v547_v25 = vor.u32 1.1754944e-38, %v546_v23  ;;  %vm545_vm3 = vcmp.eq.f32.partialorder %v544_v24, 8.507059e+37 }
 0xed4   :  { %v1421_v18 = vpop.eup %1420 }
 0xed5   :  { %v536_v19 = vmul.f32 %v1421_v18, %v534_v17  ;;  %vm541_vm15 = vweird.f32 %v1421_v18 }
 0xed6   :  { %vm542_vm2 = vmor %vm540_vm1, %vm541_vm15 }
 0xed7   :  { %v537_v20 = vsub.f32 1.0, %v536_v19 }
 0xed9   :  { %v538_v21 = vmul.f32 %v1421_v18, %v537_v20 }
 0xedb   :  { %v539_v22 = vadd.f32 %v1421_v18, %v538_v21 }
 0xedd   :  { %v543_v13 = vsel %vm542_vm2, %v1421_v18, %v539_v22 }
 0xede   :  { %v548_v27 = vsel %vm545_vm3, %v547_v25, %v543_v13 }
 0xedf   :  { %v554_v30 = vmul.f32 %v552_v29, %v548_v27 }
 0xf3c   :  { %v557_v26 = vpop.permute.xlu0 %556 }
 0xf3d   :  { %v559_v28 = vmul.f32 %v557_v26, %v548_v27 }
 0xf3f   :  { %561 = vrot.lane.b32.xlu1 %v559_v28, %s1524_s4 }
 0xfb1   :  { %v562_v31 = vpop.permute.xlu1 %561 }
 0xfb2   :  { %v564_v32 = vadd.f32 %v562_v31, %v554_v30 }
 0xfb4   :  { %1422 = vtanh.f32 %v564_v32  ;;  %v617_v59 = vrot.slane %v564_v32, 6 }
 0xfba   :  { %v1423_v33 = vpop.eup %1422 }
 0xfbb   :  { %567 = vrot.lane.b32.xlu2 %v1423_v33, %s1523_s2 }
0x1015   :  { %v568_v34 = vpop.permute.xlu2 %567 }
0x1016   :  { %v570_v35 = vmul.f32 %v568_v34, %v548_v27 }
0x1018   :  { %v571_v39 = vpack.c.bf16 %v570_v35, %v570_v35  ;;  %v1673_v40 = vsel %vm638_vm14, %v642_v36, %v570_v35 }
0x101a   :  { %v573_v41 = vrot.slane %v571_v39, 2 }
0x101c   :  { %574 = vrot.lane.b32.xlu0 %v573_v41, %s1524_s4 }
0x108e   :  { %v575_v42 = vpop.permute.xlu0 %574 }
0x108f   :  { %1305 = vmatmul.msk.bf16.vlgmr.msra.gmra.mxu1 %vm60_vm0, %v575_v42 }
0x1090   :  { %1087 = vmatpush.bf16.msra.mxu1 %v1358_v1 }
0x1094   :  { %1088 = vmatpush.bf16.msra.mxu1 %v1357_v2 }
0x110c   :  { %v588_v43 = vpop.f32.mrf.mxu1 }
0x110d   :  { %v593_v44 = vrot.slane %v588_v43, 2 }
0x110f   :  { %v595_v45 = vadd.f32 %v593_v44, %v1648_v10 }
0x1111   :  { %1424 = vtanh.f32 %v595_v45  ;;  %v1306_v37 = vmul.f32 -1.442695, %v595_v45 }
0x1113   :  { %1426 = vpow2.f32 %v1306_v37 }
0x1114   :  { %v590_v46 = vpop.f32.mrf.mxu1 }
0x1117   :  { %v1425_v47 = vpop.eup %1424 }
0x1118   :  { %621 = vrot.lane.b32.xlu1 %v1425_v47, %s1523_s2 }
0x1119   :  { %v1427_v48 = vpop.eup %1426 }
0x111a   :  { %v599_v38 = vadd.f32 1.0, %v1427_v48 }
0x111c   :  { %1428 = vrcp.f32 %v599_v38  ;;  %v611_v54 = vand.u32 2147483648, %v599_v38  ;;  %vm605_vm14 = vweird.f32 %v599_v38  ;;  %v609_v55 = vand.u32 2147483647, %v599_v38 }
0x111e   :  { %v612_v56 = vor.u32 1.1754944e-38, %v611_v54  ;;  %vm610_vm6 = vcmp.eq.f32.partialorder %v609_v55, 8.507059e+37 }
0x1122   :  { %v1429_v49 = vpop.eup %1428 }
0x1123   :  { %v601_v50 = vmul.f32 %v1429_v49, %v599_v38  ;;  %vm606_vm13 = vweird.f32 %v1429_v49 }
0x1124   :  { %vm607_vm5 = vmor %vm605_vm14, %vm606_vm13 }
0x1125   :  { %v602_v51 = vsub.f32 1.0, %v601_v50 }
0x1127   :  { %v603_v52 = vmul.f32 %v1429_v49, %v602_v51 }
0x1129   :  { %v604_v53 = vadd.f32 %v1429_v49, %v603_v52 }
0x112b   :  { %v608_v10 = vsel %vm607_vm5, %v1429_v49, %v604_v53 }
0x112c   :  { %v613_v15 = vsel %vm610_vm6, %v612_v56, %v608_v10 }
0x112d   :  { %v619_v60 = vmul.f32 %v617_v59, %v613_v15 }
0x118a   :  { %v622_v57 = vpop.permute.xlu1 %621 }
0x118b   :  { %v624_v58 = vmul.f32 %v622_v57, %v613_v15 }
0x118d   :  { %626 = vrot.lane.b32.xlu2 %v624_v58, %s1524_s4 }
0x11e7   :  { %v627_v61 = vpop.permute.xlu2 %626 }
0x11e8   :  { %v629_v62 = vadd.f32 %v627_v61, %v619_v60 }
0x11ea   :  { %1430 = vtanh.f32 %v629_v62 }
0x11f0   :  { %v1431_v63 = vpop.eup %1430 }
0x11f1   :  { %632 = vrot.lane.b32.xlu0 %v1431_v63, %s1523_s2 }
0x1263   :  { %v633_v4 = vpop.permute.xlu0 %632 }
0x1264   :  { %v635_v6 = vmul.f32 %v633_v4, %v613_v15 }
0x1266   :  { %v644_v8 = vsel %vm640_vm4, %v1673_v40, %v635_v6 }
0x1267   :  { %v645_v9 = vpack.c.bf16 %v644_v8, %v1643_v7 }
0x1269   :  { %655 = vrot.lane.b32.xlu1 %v645_v9, %s1524_s4 }
0x12db   :  { %v656_v12 = vpop.permute.xlu1 %655 }
0x12dc   :  { %1315 = vmatmul.msk.bf16.vlgmr.msra.gmra.mxu2 %vm60_vm0, %v656_v12 }
0x12dd   :  { %1152 = vmatpush.bf16.msra.mxu2 %v1358_v1 }
0x12e1   :  { %1153 = vmatpush.bf16.msra.mxu2 %v1357_v2 }
0x135f   :  { %v681_v16 = vpop.f32.mrf.mxu2 }
0x1360   :  { %v1705_v17 = vadd.f32 %v1702_v14, %v681_v16 }
0x1362   :  { %v715_v7 = vadd.f32 %v711_v11, %v1705_v17 }
0x1364   :  { %1432 = vtanh.f32 %v715_v7  ;;  %v1324_v19 = vmul.f32 -1.442695, %v715_v7 }
0x1366   :  { %1434 = vpow2.f32 %v1324_v19 }
0x136a   :  { %v1433_v18 = vpop.eup %1432 }
0x136b   :  { %738 = vrot.lane.b32.xlu2 %v1433_v18, %s1523_s2 }
0x136c   :  { %v1435_v20 = vpop.eup %1434 }
0x136d   :  { %v719_v21 = vadd.f32 1.0, %v1435_v20 }
0x136f   :  { %1436 = vrcp.f32 %v719_v21  ;;  %v731_v26 = vand.u32 2147483648, %v719_v21  ;;  %vm725_vm7 = vweird.f32 %v719_v21  ;;  %v729_v27 = vand.u32 2147483647, %v719_v21 }
0x1371   :  { %v732_v29 = vor.u32 1.1754944e-38, %v731_v26  ;;  %vm730_vm9 = vcmp.eq.f32.partialorder %v729_v27, 8.507059e+37 }
0x1375   :  { %v1437_v22 = vpop.eup %1436 }
0x1376   :  { %v721_v23 = vmul.f32 %v1437_v22, %v719_v21  ;;  %vm726_vm4 = vweird.f32 %v1437_v22 }
0x1377   :  { %vm727_vm8 = vmor %vm725_vm7, %vm726_vm4 }
0x1378   :  { %v722_v24 = vsub.f32 1.0, %v721_v23 }
0x137a   :  { %v723_v13 = vmul.f32 %v1437_v22, %v722_v24 }
0x137c   :  { %v724_v25 = vadd.f32 %v1437_v22, %v723_v13 }
0x137e   :  { %v728_v28 = vsel %vm727_vm8, %v1437_v22, %v724_v25 }
0x137f   :  { %v733_v31 = vsel %vm730_vm9, %v732_v29, %v728_v28 }
0x1380   :  { %v736_v33 = vmul.f32 0.0, %v733_v31 }
0x13c5   :  { %v739_v30 = vpop.permute.xlu2 %738 }
0x13c6   :  { %v741_v32 = vmul.f32 %v739_v30, %v733_v31 }
0x13c8   :  { %743 = vrot.lane.b32.xlu0 %v741_v32, %s1524_s4 }
0x143a   :  { %v744_v34 = vpop.permute.xlu0 %743 }
0x143b   :  { %v746_v35 = vadd.f32 %v744_v34, %v736_v33 }
0x143d   :  { %1438 = vtanh.f32 %v746_v35  ;;  %v798_v59 = vrot.slane %v746_v35, 6 }
0x1443   :  { %v1439_v36 = vpop.eup %1438 }
0x1444   :  { %749 = vrot.lane.b32.xlu1 %v1439_v36, %s1523_s2 }
0x14b6   :  { %v750_v39 = vpop.permute.xlu1 %749 }
0x14b7   :  { %v752_v40 = vmul.f32 %v750_v39, %v733_v31 }
0x14b9   :  { %v753_v41 = vpack.c.bf16 %v752_v40, %v752_v40 }
0x14bb   :  { %755 = vrot.lane.b32.xlu2 %v753_v41, %s1524_s4  ;;  %v683_v41 = vpop.f32.mrf.mxu2 }
0x1515   :  { %v756_v42 = vpop.permute.xlu2 %755 }
0x1516   :  { %1325 = vmatmul.msk.bf16.vlgmr.msrb.gmra.mxu0 %vm60_vm0, %v756_v42 }
0x1593   :  { %v769_v43 = vpop.f32.mrf.mxu0 }
0x1594   :  { %v774_v44 = vrot.slane %v769_v43, 6 }
0x1596   :  { %v776_v45 = vadd.f32 %v774_v44, %v1705_v17 }
0x1598   :  { %1440 = vtanh.f32 %v776_v45  ;;  %v1326_v37 = vmul.f32 -1.442695, %v776_v45 }
0x159a   :  { %1442 = vpow2.f32 %v1326_v37 }
0x159b   :  { %v771_v46 = vpop.f32.mrf.mxu0 }
0x159e   :  { %v1441_v47 = vpop.eup %1440 }
0x159f   :  { %802 = vrot.lane.b32.xlu0 %v1441_v47, %s1523_s2 }
0x15a0   :  { %v1443_v48 = vpop.eup %1442 }
0x15a1   :  { %v780_v38 = vadd.f32 1.0, %v1443_v48 }
0x15a3   :  { %1444 = vrcp.f32 %v780_v38  ;;  %v792_v54 = vand.u32 2147483648, %v780_v38  ;;  %vm786_vm11 = vweird.f32 %v780_v38  ;;  %v790_v55 = vand.u32 2147483647, %v780_v38 }
0x15a5   :  { %v793_v56 = vor.u32 1.1754944e-38, %v792_v54  ;;  %vm791_vm15 = vcmp.eq.f32.partialorder %v790_v55, 8.507059e+37 }
0x15a9   :  { %v1445_v49 = vpop.eup %1444 }
0x15aa   :  { %v782_v50 = vmul.f32 %v1445_v49, %v780_v38  ;;  %vm787_vm10 = vweird.f32 %v1445_v49 }
0x15ab   :  { %vm788_vm12 = vmor %vm786_vm11, %vm787_vm10 }
0x15ac   :  { %v783_v51 = vsub.f32 1.0, %v782_v50 }
0x15ae   :  { %v784_v52 = vmul.f32 %v1445_v49, %v783_v51 }
0x15b0   :  { %v785_v53 = vadd.f32 %v1445_v49, %v784_v52 }
0x15b2   :  { %v789_v10 = vsel %vm788_vm12, %v1445_v49, %v785_v53 }
0x15b3   :  { %v794_v15 = vsel %vm791_vm15, %v793_v56, %v789_v10 }
0x15b4   :  { %v800_v60 = vmul.f32 %v798_v59, %v794_v15 }
0x1611   :  { %v803_v57 = vpop.permute.xlu0 %802 }
0x1612   :  { %v805_v58 = vmul.f32 %v803_v57, %v794_v15 }
0x1614   :  { %807 = vrot.lane.b32.xlu1 %v805_v58, %s1524_s4 }
0x1686   :  { %v808_v61 = vpop.permute.xlu1 %807 }
0x1687   :  { %v810_v62 = vadd.f32 %v808_v61, %v800_v60 }
0x1689   :  { %1446 = vtanh.f32 %v810_v62  ;;  %v863_v29 = vrot.slane %v810_v62, 6 }
0x168f   :  { %v1447_v63 = vpop.eup %1446 }
0x1690   :  { %813 = vrot.lane.b32.xlu2 %v1447_v63, %s1523_s2 }
0x16ea   :  { %v814_v0 = vpop.permute.xlu2 %813 }
0x16eb   :  { %v816_v1 = vmul.f32 %v814_v0, %v794_v15 }
0x16ed   :  { %v817_v2 = vpack.c.bf16 %v816_v1, %v816_v1 }
0x16ef   :  { %v819_v3 = vrot.slane %v817_v2, 1 }
0x16f1   :  { %820 = vrot.lane.b32.xlu0 %v819_v3, %s1524_s4  ;;  %v1732_v3 = vadd.f32 %v1702_v14, %v683_v41 }
0x1763   :  { %v821_v4 = vpop.permute.xlu0 %820 }
0x1764   :  { %1327 = vmatmul.msk.bf16.vlgmr.msrb.gmra.mxu1 %vm60_vm0, %v821_v4 }
0x17e1   :  { %v834_v6 = vpop.f32.mrf.mxu1 }
0x17e2   :  { %v839_v8 = vrot.slane %v834_v6, 4 }
0x17e4   :  { %v841_v9 = vadd.f32 %v839_v8, %v1705_v17 }
0x17e6   :  { %1448 = vtanh.f32 %v841_v9  ;;  %v1328_v5 = vmul.f32 -1.442695, %v841_v9 }
0x17e8   :  { %1450 = vpow2.f32 %v1328_v5 }
0x17e9   :  { %v836_v11 = vpop.f32.mrf.mxu1 }
0x17ec   :  { %v1449_v12 = vpop.eup %1448 }
0x17ed   :  { %867 = vrot.lane.b32.xlu1 %v1449_v12, %s1523_s2 }
0x17ee   :  { %v1451_v16 = vpop.eup %1450 }
0x17ef   :  { %v845_v7 = vadd.f32 1.0, %v1451_v16 }
0x17f1   :  { %1452 = vrcp.f32 %v845_v7  ;;  %v857_v23 = vand.u32 2147483648, %v845_v7  ;;  %vm851_vm2 = vweird.f32 %v845_v7  ;;  %v855_v24 = vand.u32 2147483647, %v845_v7 }
0x17f3   :  { %v858_v25 = vor.u32 1.1754944e-38, %v857_v23  ;;  %vm856_vm13 = vcmp.eq.f32.partialorder %v855_v24, 8.507059e+37 }
0x17f7   :  { %v1453_v18 = vpop.eup %1452 }
0x17f8   :  { %v847_v19 = vmul.f32 %v1453_v18, %v845_v7  ;;  %vm852_vm1 = vweird.f32 %v1453_v18 }
0x17f9   :  { %vm853_vm3 = vmor %vm851_vm2, %vm852_vm1 }
0x17fa   :  { %v848_v20 = vsub.f32 1.0, %v847_v19 }
0x17fc   :  { %v849_v21 = vmul.f32 %v1453_v18, %v848_v20 }
0x17fe   :  { %v850_v22 = vadd.f32 %v1453_v18, %v849_v21 }
0x1800   :  { %v854_v13 = vsel %vm853_vm3, %v1453_v18, %v850_v22 }
0x1801   :  { %v859_v27 = vsel %vm856_vm13, %v858_v25, %v854_v13 }
0x1802   :  { %v865_v30 = vmul.f32 %v863_v29, %v859_v27 }
0x185f   :  { %v868_v26 = vpop.permute.xlu1 %867 }
0x1860   :  { %v870_v28 = vmul.f32 %v868_v26, %v859_v27 }
0x1862   :  { %872 = vrot.lane.b32.xlu2 %v870_v28, %s1524_s4 }
0x18bc   :  { %v873_v31 = vpop.permute.xlu2 %872 }
0x18bd   :  { %v875_v32 = vadd.f32 %v873_v31, %v865_v30 }
0x18bf   :  { %1454 = vtanh.f32 %v875_v32  ;;  %v928_v15 = vrot.slane %v875_v32, 6 }
0x18c5   :  { %v1455_v33 = vpop.eup %1454 }
0x18c6   :  { %878 = vrot.lane.b32.xlu0 %v1455_v33, %s1523_s2 }
0x1938   :  { %v879_v34 = vpop.permute.xlu0 %878 }
0x1939   :  { %v881_v35 = vmul.f32 %v879_v34, %v859_v27 }
0x193b   :  { %v882_v36 = vpack.c.bf16 %v881_v35, %v881_v35 }
0x193d   :  { %v884_v39 = vrot.slane %v882_v36, 2 }
0x193f   :  { %885 = vrot.lane.b32.xlu1 %v884_v39, %s1524_s4 }
0x19b1   :  { %v886_v40 = vpop.permute.xlu1 %885 }
0x19b2   :  { %1329 = vmatmul.msk.bf16.vlgmr.msrb.gmra.mxu2 %vm60_vm0, %v886_v40 }
0x1a35   :  { %v899_v42 = vpop.f32.mrf.mxu2 }
0x1a36   :  { %v904_v43 = vrot.slane %v899_v42, 2 }
0x1a38   :  { %v906_v44 = vadd.f32 %v904_v43, %v1705_v17 }
0x1a3a   :  { %1456 = vtanh.f32 %v906_v44  ;;  %v1330_v47 = vmul.f32 -1.442695, %v906_v44 }
0x1a3c   :  { %1458 = vpow2.f32 %v1330_v47 }
0x1a3d   :  { %v901_v45 = vpop.f32.mrf.mxu2 }
0x1a40   :  { %v1457_v46 = vpop.eup %1456 }
0x1a41   :  { %932 = vrot.lane.b32.xlu2 %v1457_v46, %s1523_s2 }
0x1a42   :  { %v1459_v37 = vpop.eup %1458 }
0x1a43   :  { %v910_v48 = vadd.f32 1.0, %v1459_v37 }
0x1a45   :  { %1460 = vrcp.f32 %v910_v48  ;;  %v922_v53 = vand.u32 2147483648, %v910_v48  ;;  %vm916_vm5 = vweird.f32 %v910_v48  ;;  %v920_v54 = vand.u32 2147483647, %v910_v48 }
0x1a47   :  { %v923_v55 = vor.u32 1.1754944e-38, %v922_v53  ;;  %vm921_vm4 = vcmp.eq.f32.partialorder %v920_v54, 8.507059e+37 }
0x1a4b   :  { %v1461_v38 = vpop.eup %1460 }
0x1a4c   :  { %v912_v49 = vmul.f32 %v1461_v38, %v910_v48  ;;  %vm917_vm14 = vweird.f32 %v1461_v38 }
0x1a4d   :  { %vm918_vm6 = vmor %vm916_vm5, %vm917_vm14 }
0x1a4e   :  { %v913_v50 = vsub.f32 1.0, %v912_v49 }
0x1a50   :  { %v914_v51 = vmul.f32 %v1461_v38, %v913_v50 }
0x1a52   :  { %v915_v52 = vadd.f32 %v1461_v38, %v914_v51 }
0x1a54   :  { %v919_v17 = vsel %vm918_vm6, %v1461_v38, %v915_v52 }
0x1a55   :  { %v924_v56 = vsel %vm921_vm4, %v923_v55, %v919_v17 }
0x1a56   :  { %v930_v58 = vmul.f32 %v928_v15, %v924_v56 }
0x1a9b   :  { %v933_v10 = vpop.permute.xlu2 %932 }
0x1a9c   :  { %v935_v57 = vmul.f32 %v933_v10, %v924_v56 }
0x1a9e   :  { %937 = vrot.lane.b32.xlu0 %v935_v57, %s1524_s4 }
0x1b10   :  { %v938_v59 = vpop.permute.xlu0 %937 }
0x1b11   :  { %v940_v60 = vadd.f32 %v938_v59, %v930_v58 }
0x1b13   :  { %1462 = vtanh.f32 %v940_v60  ;;  %v990_v26 = vrot.slane %v940_v60, 6 }
0x1b19   :  { %v1463_v61 = vpop.eup %1462 }
0x1b1a   :  { %943 = vrot.lane.b32.xlu1 %v1463_v61, %s1523_s2 }
0x1b8c   :  { %v944_v62 = vpop.permute.xlu1 %943 }
0x1b8d   :  { %v946_v63 = vmul.f32 %v944_v62, %v924_v56 }
0x1b8f   :  { %v947_v0 = vpack.c.bf16 %v946_v63, %v946_v63 }
0x1b91   :  { %v949_v1 = vrot.slane %v947_v0, 3 }
0x1b93   :  { %950 = vrot.lane.b32.xlu2 %v949_v1, %s1524_s4 }
0x1bed   :  { %v951_v2 = vpop.permute.xlu2 %950 }
0x1bee   :  { %1331 = vmatmul.msk.bf16.vlgmr.msrb.gmra.mxu3 %vm60_vm0, %v951_v2 }
0x1c71   :  { %v964_v4 = vpop.f32.mrf.mxu3 }
0x1c72   :  { %v968_v6 = vadd.f32 %v964_v4, %v1732_v3 }
0x1c74   :  { %1464 = vtanh.f32 %v968_v6  ;;  %v1332_v11 = vmul.f32 -1.442695, %v968_v6 }
0x1c76   :  { %1466 = vpow2.f32 %v1332_v11 }
0x1c79   :  { %v966_v8 = vpop.f32.mrf.mxu3 }
0x1c7a   :  { %v1465_v9 = vpop.eup %1464 }
0x1c7b   :  { %994 = vrot.lane.b32.xlu0 %v1465_v9, %s1523_s2 }
0x1c7c   :  { %v1467_v12 = vpop.eup %1466 }
0x1c7d   :  { %v972_v5 = vadd.f32 1.0, %v1467_v12 }
0x1c7f   :  { %1468 = vrcp.f32 %v972_v5  ;;  %v984_v14 = vand.u32 2147483648, %v972_v5  ;;  %vm978_vm8 = vweird.f32 %v972_v5  ;;  %v982_v21 = vand.u32 2147483647, %v972_v5 }
0x1c81   :  { %v985_v23 = vor.u32 1.1754944e-38, %v984_v14  ;;  %vm983_vm10 = vcmp.eq.f32.partialorder %v982_v21, 8.507059e+37 }
0x1c85   :  { %v1469_v16 = vpop.eup %1468 }
0x1c86   :  { %v974_v7 = vmul.f32 %v1469_v16, %v972_v5  ;;  %vm979_vm7 = vweird.f32 %v1469_v16 }
0x1c87   :  { %vm980_vm9 = vmor %vm978_vm8, %vm979_vm7  ;;  %vm1244_vm8 = vcmask 254976  }
0x1c88   :  { %v975_v18 = vsub.f32 1.0, %v974_v7 }
0x1c8a   :  { %v976_v19 = vmul.f32 %v1469_v16, %v975_v18 }
0x1c8c   :  { %v977_v20 = vadd.f32 %v1469_v16, %v976_v19 }
0x1c8e   :  { %v981_v22 = vsel %vm980_vm9, %v1469_v16, %v977_v20 }
0x1c8f   :  { %v986_v13 = vsel %vm983_vm10, %v985_v23, %v981_v22 }
0x1c90   :  { %v992_v27 = vmul.f32 %v990_v26, %v986_v13 }
0x1ced   :  { %v995_v24 = vpop.permute.xlu0 %994 }
0x1cee   :  { %v997_v25 = vmul.f32 %v995_v24, %v986_v13 }
0x1cf0   :  { %999 = vrot.lane.b32.xlu1 %v997_v25, %s1524_s4 }
0x1d62   :  { %v1000_v28 = vpop.permute.xlu1 %999 }
0x1d63   :  { %v1002_v29 = vadd.f32 %v1000_v28, %v992_v27 }
0x1d65   :  { %1470 = vtanh.f32 %v1002_v29  ;;  %v1054_v17 = vrot.slane %v1002_v29, 6 }
0x1d6b   :  { %v1471_v30 = vpop.eup %1470 }
0x1d6c   :  { %1005 = vrot.lane.b32.xlu2 %v1471_v30, %s1523_s2 }
0x1dc6   :  { %v1006_v31 = vpop.permute.xlu2 %1005 }
0x1dc7   :  { %v1008_v32 = vmul.f32 %v1006_v31, %v986_v13 }
0x1dc9   :  { %v1009_v33 = vpack.c.bf16 %v1008_v32, %v1008_v32 }
0x1dcb   :  { %1011 = vrot.lane.b32.xlu0 %v1009_v33, %s1524_s4 }
0x1e3d   :  { %v1012_v34 = vpop.permute.xlu0 %1011 }
0x1e3e   :  { %1333 = vmatmul.msk.bf16.vlgmr.msra.gmra.mxu0 %vm60_vm0, %v1012_v34 }
0x1ebb   :  { %v1025_v35 = vpop.f32.mrf.mxu0 }
0x1ebc   :  { %v1030_v36 = vrot.slane %v1025_v35, 6 }
0x1ebe   :  { %v1032_v39 = vadd.f32 %v1030_v36, %v1732_v3 }
0x1ec0   :  { %1472 = vtanh.f32 %v1032_v39  ;;  %v1334_v42 = vmul.f32 -1.442695, %v1032_v39 }
0x1ec2   :  { %1474 = vpow2.f32 %v1334_v42 }
0x1ec3   :  { %v1027_v40 = vpop.f32.mrf.mxu0 }
0x1ec6   :  { %v1473_v41 = vpop.eup %1472 }
0x1ec7   :  { %1058 = vrot.lane.b32.xlu1 %v1473_v41, %s1523_s2 }
0x1ec8   :  { %v1475_v43 = vpop.eup %1474 }
0x1ec9   :  { %v1036_v44 = vadd.f32 1.0, %v1475_v43 }
0x1ecb   :  { %1476 = vrcp.f32 %v1036_v44  ;;  %v1048_v38 = vand.u32 2147483648, %v1036_v44  ;;  %vm1042_vm12 = vweird.f32 %v1036_v44  ;;  %v1046_v49 = vand.u32 2147483647, %v1036_v44 }
0x1ecd   :  { %v1049_v51 = vor.u32 1.1754944e-38, %v1048_v38  ;;  %vm1047_vm1 = vcmp.eq.f32.partialorder %v1046_v49, 8.507059e+37 }
0x1ed1   :  { %v1477_v45 = vpop.eup %1476 }
0x1ed2   :  { %v1038_v46 = vmul.f32 %v1477_v45, %v1036_v44  ;;  %vm1043_vm11 = vweird.f32 %v1477_v45 }
0x1ed3   :  { %vm1044_vm15 = vmor %vm1042_vm12, %vm1043_vm11 }
0x1ed4   :  { %v1039_v47 = vsub.f32 1.0, %v1038_v46 }
0x1ed6   :  { %v1040_v37 = vmul.f32 %v1477_v45, %v1039_v47 }
0x1ed8   :  { %v1041_v48 = vadd.f32 %v1477_v45, %v1040_v37 }
0x1eda   :  { %v1045_v50 = vsel %vm1044_vm15, %v1477_v45, %v1041_v48 }
0x1edb   :  { %v1050_v53 = vsel %vm1047_vm1, %v1049_v51, %v1045_v50 }
0x1edc   :  { %v1056_v55 = vmul.f32 %v1054_v17, %v1050_v53 }
0x1f39   :  { %v1059_v52 = vpop.permute.xlu1 %1058 }
0x1f3a   :  { %v1061_v54 = vmul.f32 %v1059_v52, %v1050_v53 }
0x1f3c   :  { %1063 = vrot.lane.b32.xlu2 %v1061_v54, %s1524_s4 }
0x1f96   :  { %v1064_v10 = vpop.permute.xlu2 %1063 }
0x1f97   :  { %v1066_v56 = vadd.f32 %v1064_v10, %v1056_v55  ;;  %v1360_v55 = vld [vmem:[%s1778_s8 + $0x8] sm:$0xff]  ;;  %v1359_v10 = vld [vmem:[%s1778_s8] sm:$0xff]  ;;  %s1253_s8 = sshll.u32 %s1780_s10, 4  ;;  %s1254_s8 = int_to_ptr.hbm [resolvable:$true] %s1253_s8 }
0x1f98   :  { %1237 = vmatpush.bf16.msra.mxu3 %v1360_v55 }
0x1f99   :  { %1478 = vtanh.f32 %v1066_v56  ;;  %v1119_v23 = vrot.slane %v1066_v56, 6 }
0x1f9c   :  { %1238 = vmatpush.bf16.msra.mxu3 %v1359_v10 }
0x1f9f   :  { %v1479_v57 = vpop.eup %1478 }
0x1fa0   :  { %1069 = vrot.lane.b32.xlu0 %v1479_v57, %s1523_s2 }
0x2012   :  { %v1070_v15 = vpop.permute.xlu0 %1069 }
0x2013   :  { %v1072_v58 = vmul.f32 %v1070_v15, %v1050_v53 }
0x2015   :  { %v1073_v59 = vpack.c.bf16 %v1072_v58, %v1072_v58 }
0x2017   :  { %v1075_v60 = vrot.slane %v1073_v59, 1 }
0x2019   :  { %1076 = vrot.lane.b32.xlu1 %v1075_v60, %s1524_s4  ;;  %v1367_v60 = vld [vmem:[%s1779_s9] ss:$0 sm:$0xff] }
0x208b   :  { %v1077_v61 = vpop.permute.xlu1 %1076 }
0x208c   :  { %1335 = vmatmul.msk.bf16.vlgmr.msra.gmra.mxu1 %vm60_vm0, %v1077_v61 }
0x2109   :  { %v1090_v62 = vpop.f32.mrf.mxu1 }
0x210a   :  { %v1095_v63 = vrot.slane %v1090_v62, 4 }
0x210c   :  { %v1097_v0 = vadd.f32 %v1095_v63, %v1732_v3 }
0x210e   :  { %1480 = vtanh.f32 %v1097_v0  ;;  %v1336_v4 = vmul.f32 -1.442695, %v1097_v0 }
0x2110   :  { %1482 = vpow2.f32 %v1336_v4 }
0x2111   :  { %v1092_v1 = vpop.f32.mrf.mxu1 }
0x2114   :  { %v1481_v2 = vpop.eup %1480 }
0x2115   :  { %1123 = vrot.lane.b32.xlu2 %v1481_v2, %s1523_s2 }
0x2116   :  { %v1483_v6 = vpop.eup %1482 }
0x2117   :  { %v1101_v8 = vadd.f32 1.0, %v1483_v6 }
0x2119   :  { %1484 = vrcp.f32 %v1101_v8  ;;  %v1113_v7 = vand.u32 2147483648, %v1101_v8  ;;  %vm1107_vm3 = vweird.f32 %v1101_v8  ;;  %v1111_v18 = vand.u32 2147483647, %v1101_v8 }
0x211b   :  { %v1114_v20 = vor.u32 1.1754944e-38, %v1113_v7  ;;  %vm1112_vm14 = vcmp.eq.f32.partialorder %v1111_v18, 8.507059e+37 }
0x211f   :  { %v1485_v9 = vpop.eup %1484 }
0x2120   :  { %v1103_v11 = vmul.f32 %v1485_v9, %v1101_v8  ;;  %vm1108_vm2 = vweird.f32 %v1485_v9 }
0x2121   :  { %vm1109_vm13 = vmor %vm1107_vm3, %vm1108_vm2 }
0x2122   :  { %v1104_v12 = vsub.f32 1.0, %v1103_v11 }
0x2124   :  { %v1105_v5 = vmul.f32 %v1485_v9, %v1104_v12 }
0x2126   :  { %v1106_v16 = vadd.f32 %v1485_v9, %v1105_v5 }
0x2128   :  { %v1110_v19 = vsel %vm1109_vm13, %v1485_v9, %v1106_v16 }
0x2129   :  { %v1115_v21 = vsel %vm1112_vm14, %v1114_v20, %v1110_v19 }
0x212a   :  { %v1121_v24 = vmul.f32 %v1119_v23, %v1115_v21 }
0x216f   :  { %v1124_v14 = vpop.permute.xlu2 %1123 }
0x2170   :  { %v1126_v22 = vmul.f32 %v1124_v14, %v1115_v21 }
0x2172   :  { %1128 = vrot.lane.b32.xlu0 %v1126_v22, %s1524_s4 }
0x21e4   :  { %v1129_v13 = vpop.permute.xlu0 %1128 }
0x21e5   :  { %v1131_v25 = vadd.f32 %v1129_v13, %v1121_v24 }
0x21e7   :  { %1486 = vtanh.f32 %v1131_v25  ;;  %v1184_v51 = vrot.slane %v1131_v25, 6 }
0x21ed   :  { %v1487_v26 = vpop.eup %1486 }
0x21ee   :  { %1134 = vrot.lane.b32.xlu1 %v1487_v26, %s1523_s2 }
0x2260   :  { %v1135_v27 = vpop.permute.xlu1 %1134 }
0x2261   :  { %v1137_v28 = vmul.f32 %v1135_v27, %v1115_v21 }
0x2263   :  { %v1138_v29 = vpack.c.bf16 %v1137_v28, %v1137_v28 }
0x2265   :  { %v1140_v30 = vrot.slane %v1138_v29, 2 }
0x2267   :  { %1141 = vrot.lane.b32.xlu2 %v1140_v30, %s1524_s4 }
0x22c1   :  { %v1142_v31 = vpop.permute.xlu2 %1141 }
0x22c2   :  { %1337 = vmatmul.msk.bf16.vlgmr.msra.gmra.mxu2 %vm60_vm0, %v1142_v31 }
0x2345   :  { %v1155_v32 = vpop.f32.mrf.mxu2 }
0x2346   :  { %v1160_v33 = vrot.slane %v1155_v32, 2 }
0x2348   :  { %v1162_v34 = vadd.f32 %v1160_v33, %v1732_v3 }
0x234a   :  { %1488 = vtanh.f32 %v1162_v34  ;;  %v1338_v39 = vmul.f32 -1.442695, %v1162_v34 }
0x234c   :  { %1490 = vpow2.f32 %v1338_v39 }
0x234d   :  { %v1157_v35 = vpop.f32.mrf.mxu2 }
0x2350   :  { %v1489_v36 = vpop.eup %1488 }
0x2351   :  { %1188 = vrot.lane.b32.xlu0 %v1489_v36, %s1523_s2 }
0x2352   :  { %v1491_v40 = vpop.eup %1490 }
0x2353   :  { %v1166_v41 = vadd.f32 1.0, %v1491_v40 }
0x2355   :  { %1492 = vrcp.f32 %v1166_v41  ;;  %v1178_v47 = vand.u32 2147483648, %v1166_v41  ;;  %vm1172_vm6 = vweird.f32 %v1166_v41  ;;  %v1176_v37 = vand.u32 2147483647, %v1166_v41 }
0x2357   :  { %v1179_v48 = vor.u32 1.1754944e-38, %v1178_v47  ;;  %vm1177_vm7 = vcmp.eq.f32.partialorder %v1176_v37, 8.507059e+37 }
0x235b   :  { %v1493_v42 = vpop.eup %1492 }
0x235c   :  { %v1168_v43 = vmul.f32 %v1493_v42, %v1166_v41  ;;  %vm1173_vm5 = vweird.f32 %v1493_v42 }
0x235d   :  { %vm1174_vm4 = vmor %vm1172_vm6, %vm1173_vm5 }
0x235e   :  { %v1169_v44 = vsub.f32 1.0, %v1168_v43 }
0x2360   :  { %v1170_v45 = vmul.f32 %v1493_v42, %v1169_v44 }
0x2362   :  { %v1171_v46 = vadd.f32 %v1493_v42, %v1170_v45 }
0x2364   :  { %v1175_v3 = vsel %vm1174_vm4, %v1493_v42, %v1171_v46 }
0x2365   :  { %v1180_v49 = vsel %vm1177_vm7, %v1179_v48, %v1175_v3 }
0x2366   :  { %v1186_v52 = vmul.f32 %v1184_v51, %v1180_v49 }
0x23c3   :  { %v1189_v38 = vpop.permute.xlu0 %1188 }
0x23c4   :  { %v1191_v50 = vmul.f32 %v1189_v38, %v1180_v49 }
0x23c6   :  { %1193 = vrot.lane.b32.xlu1 %v1191_v50, %s1524_s4 }
0x2438   :  { %v1194_v53 = vpop.permute.xlu1 %1193 }
0x2439   :  { %v1196_v54 = vadd.f32 %v1194_v53, %v1186_v52 }
0x243b   :  { %1494 = vtanh.f32 %v1196_v54 }
0x2441   :  { %v1495_v17 = vpop.eup %1494 }
0x2442   :  { %1199 = vrot.lane.b32.xlu2 %v1495_v17, %s1523_s2 }
0x249c   :  { %v1200_v56 = vpop.permute.xlu2 %1199 }
0x249d   :  { %v1202_v57 = vmul.f32 %v1200_v56, %v1180_v49 }
0x249f   :  { %v1203_v15 = vpack.c.bf16 %v1202_v57, %v1202_v57 }
0x24a1   :  { %v1213_v58 = vrot.slane %v1203_v15, 3 }
0x24a3   :  { %1214 = vrot.lane.b32.xlu0 %v1213_v58, %s1524_s4 }
0x2515   :  { %v1215_v59 = vpop.permute.xlu0 %1214 }
0x2516   :  { %1347 = vmatmul.msk.bf16.vlgmr.msra.gmra.mxu3 %vm60_vm0, %v1215_v59 }
0x2599   :  { %v1240_v61 = vpop.f32.mrf.mxu3 }
0x259a   :  { %v1241_v62 = vadd.f32 %v1367_v60, %v1240_v61 }
0x259c   :  { %1245 = vst.msk [vmem:[#allocation2] sm:$0x3] %vm1244_vm8, %v1241_v62 }
0x259d   :  { %1256 = dma.vmem_to_hbm [thread:$0]  %s1252_s20, 32, %s1254_s8, [#allocation3]  }
0x25a1   :  { %v1242_v63 = vpop.f32.mrf.mxu3 }
0x25a2   :  { %1520 = dma.done.wait [#allocation3], 32  }
0x25a3   :  { %1521 = vsyncadd [#allocation3], 4294967264 }
0x25a4   :  { %1261 = vsyncpa [#allocation3], 1 }

</bundles_post_ra>
